<compile_context>
chip_gen: v5e
topology: v5e:2x2
jax: 0.10.0
libtpu: 0.0.40
codegen_flags: <defaults>
</compile_context>

<pallas_src>
import functools

import jax
import jax.numpy as jnp
from jax.experimental import pallas as pl
from jax.experimental.pallas import tpu as pltpu


def _vmem_capacity_bytes():
    """Physical per-core VMEM; conservative v7x default if the query is unavailable."""
    try:
        cap = getattr(pltpu.get_tpu_info(), "vmem_capacity_bytes", None)
        if cap:
            return int(cap)
    except Exception:
        pass
    return 64 << 20


def _choose_tiles(B, HW, C, itemsize, vmem_budget):
    """Pick (tb, hw_chunk) for the (batch, HW) grid from the VMEM budget.

    Goals: per-step feature DMA >= ~1 MiB (HBM roofline knee), total grid depth >= ~8
    steps (>= 2-4 per TensorCore), double-buffered block + accumulator within budget.
    """
    MIN_STEP_BYTES = 1 << 20      # per-step DMA target
    MIN_STEP_FLOOR = 256 << 10    # allow smaller steps only to gain pipeline depth
    TARGET_STEPS = 8
    SLACK = 4 << 20               # weight/bias/out blocks + compiler internal scratch

    # sublane packing granule of the feature dtype: 8 (f32), 16 (bf16), 32 (int8)
    sub = 8 * max(1, 4 // itemsize)
    b_units = -(-B // 8)
    h_units = -(-HW // sub)

    def feat_bytes(tu, hu):
        return (tu * 8) * (hu * sub) * C * itemsize

    def vmem_bytes(tu, hu):
        tb, hwc = tu * 8, hu * sub
        return (2 * tb * hwc * C * itemsize   # double-buffered feature block
                + tb * sub * C * 4            # f32 upcast of one sublane slab
                + tb * C * 4)                 # f32 (tb, C) accumulator scratch

    def n_steps(tu, hu):
        return (-(-b_units // tu)) * (-(-h_units // hu))

    tu, hu = b_units, h_units

    # 1) shrink (larger axis first) until the per-step footprint fits the budget
    while vmem_bytes(tu, hu) + SLACK > vmem_budget and (tu > 1 or hu > 1):
        if tu >= hu and tu > 1:
            tu = (tu + 1) // 2
        else:
            hu = (hu + 1) // 2

    # 2) split further for pipeline depth, preferring the batch axis and keeping each
    #    step's DMA above the roofline knee when the problem size allows it
    while n_steps(tu, hu) < TARGET_STEPS:
        if tu > 1 and feat_bytes((tu + 1) // 2, hu) >= MIN_STEP_BYTES:
            tu = (tu + 1) // 2
        elif hu > 1 and feat_bytes(tu, (hu + 1) // 2) >= MIN_STEP_BYTES:
            hu = (hu + 1) // 2
        elif tu > 1 and feat_bytes((tu + 1) // 2, hu) >= MIN_STEP_FLOOR:
            tu = (tu + 1) // 2
        elif hu > 1 and feat_bytes(tu, (hu + 1) // 2) >= MIN_STEP_FLOOR:
            hu = (hu + 1) // 2
        else:
            break
    return tu * 8, hu * sub, sub


def _net_kernel(x_ref, w_ref, b_ref, o_ref, acc_ref, *, n_slabs, slab):
    # x_ref: (tb, hw_chunk, C) feature slab (bf16/f32), channels lane-dense
    # w_ref: (OUT, C) fc weight, pre-scaled by 1/HW, f32, lane-dense
    # b_ref: (1, OUT) fc bias, f32
    # o_ref: (tb, OUT) logits
    # acc_ref: (tb, C) f32 running sum over HW
    hw = pl.program_id(1)

    @pl.when(hw == 0)
    def _init():
        acc_ref[...] = jnp.zeros_like(acc_ref)

    if n_slabs == 1:
        acc_ref[...] += jnp.sum(x_ref[...].astype(jnp.float32), axis=1)
    else:
        # accumulate one packing-aligned sublane slab at a time: no full f32 tile copy
        def body(s, carry):
            off = pl.multiple_of(s * slab, slab)
            sl = x_ref[:, pl.ds(off, slab), :].astype(jnp.float32)
            acc_ref[...] += jnp.sum(sl, axis=1)
            return carry

        jax.lax.fori_loop(0, n_slabs, body, 0, unroll=n_slabs <= 8)

    @pl.when(hw == pl.num_programs(1) - 1)
    def _finish():
        # contraction over C keeps C on lanes for both operands ('bc,oc->bo');
        # 1/HW already folded into w, so acc (sum) * w_scaled == mean @ W^T
        logits = jax.lax.dot_general(
            acc_ref[...], w_ref[...],
            (((1,), (1,)), ((), ())),
            preferred_element_type=jnp.float32)
        o_ref[...] = logits + b_ref[...]


def net_forward(feats_bhwc, fc_weight, fc_bias):
    """feats_bhwc: (B, HW, C) features from the opaque conv stack (channels last).
    fc_weight: (OUT, C) PyTorch Linear weight (NOT transposed). fc_bias: (OUT,).
    Returns (B, OUT) f32 logits = fc(global_avg_pool(feats))."""
    B, HW, C = feats_bhwc.shape
    OUT, C_w = fc_weight.shape
    assert C_w == C

    itemsize = jnp.dtype(feats_bhwc.dtype).itemsize
    vmem_cap = _vmem_capacity_bytes()
    budget = (3 * vmem_cap) // 4           # 48 MiB on v7x, 96 MiB on v5e/v6e

    tb, hw_chunk, slab = _choose_tiles(B, HW, C, itemsize, budget)
    n_slabs = hw_chunk // slab

    Bp = -(-B // tb) * tb
    HWp = -(-HW // hw_chunk) * hw_chunk
    if (Bp, HWp) != (B, HW):
        # zero padding: contributes nothing to the sum; padded batch rows sliced off
        feats_bhwc = jnp.pad(feats_bhwc, ((0, Bp - B), (0, HWp - HW), (0, 0)))

    # fold the mean scale (true HW) + f32 cast into the tiny resident weight
    w = fc_weight.astype(jnp.float32) * (1.0 / HW)           # (OUT, C)
    b = fc_bias.reshape(1, OUT).astype(jnp.float32)          # (1, OUT)

    cost = pl.CostEstimate(
        flops=Bp * HWp * C + 2 * Bp * C * OUT,
        transcendentals=0,
        bytes_accessed=Bp * HWp * C * itemsize + OUT * C * 4 + OUT * 4 + Bp * OUT * 4,
    )

    out = pl.pallas_call(
        functools.partial(_net_kernel, n_slabs=n_slabs, slab=slab),
        out_shape=jax.ShapeDtypeStruct((Bp, OUT), jnp.float32),
        grid_spec=pltpu.PrefetchScalarGridSpec(
            num_scalar_prefetch=0,
            grid=(Bp // tb, HWp // hw_chunk),
            in_specs=[
                pl.BlockSpec((tb, hw_chunk, C), lambda i, j: (i, j, 0)),  # features
                pl.BlockSpec((OUT, C), lambda i, j: (0, 0)),              # resident weight
                pl.BlockSpec((1, OUT), lambda i, j: (0, 0)),              # resident bias
            ],
            out_specs=pl.BlockSpec((tb, OUT), lambda i, j: (i, 0)),
            scratch_shapes=[pltpu.VMEM((tb, C), jnp.float32)],            # HW-sum accumulator
        ),
        compiler_params=pltpu.CompilerParams(
            dimension_semantics=("parallel", "arbitrary"),  # batch across TCs, HW reduce
            vmem_limit_bytes=int(budget),
        ),
        cost_estimate=cost,
    )(feats_bhwc, w, b)
    return out[:B]


if __name__ == "__main__":
    key = jax.random.PRNGKey(0)
    k_x, k_w, k_b = jax.random.split(key, 3)

    # Small shapes consistent with the module: fc expects 2048 input features.
    B, C, H, W = 16, 2048, 4, 4
    OUT = 2
    HW = H * W

    # Features as emitted by the (opaque) backbone, channels-last; bf16 halves HBM reads.
    feats = jax.random.normal(k_x, (B, HW, C), dtype=jnp.float32).astype(jnp.bfloat16)

    # Deterministic fc params (PyTorch Linear: weight (out, in), bias (out,))
    bound = 1.0 / (C ** 0.5)
    fc_weight = jax.random.uniform(k_w, (OUT, C), minval=-bound, maxval=bound,
                                   dtype=jnp.float32)
    fc_bias = jax.random.uniform(k_b, (OUT,), minval=-bound, maxval=bound,
                                 dtype=jnp.float32)

    out = net_forward(feats, fc_weight, fc_bias)
    out = jax.block_until_ready(out)

    # Reference in plain JAX (same bf16-rounded inputs, f32 accumulation).
    ref = jnp.mean(feats.astype(jnp.float32), axis=1) @ fc_weight.T + fc_bias
    assert out.shape == (B, OUT)
    assert jnp.allclose(out, ref, atol=2e-3, rtol=2e-3)

    print("KERNEL_OK")
</pallas_src>

<mosaic_0001>
module attributes {stable_mosaic.version = 11 : i64} {
  func.func @_net_kernel(%arg0: i32, %arg1: i32, %arg2: memref<8x16x2048xbf16, #tpu.memory_space<vmem>>, %arg3: memref<2x2048xf32, #tpu.memory_space<vmem>>, %arg4: memref<1x2xf32, #tpu.memory_space<vmem>>, %arg5: memref<8x2xf32, #tpu.memory_space<vmem>>, %arg6: memref<8x2048xf32, #tpu.memory_space<vmem>>) attributes {dimension_semantics = [#tpu.dimension_semantics<parallel>, #tpu.dimension_semantics<arbitrary>], iteration_bounds = array<i64: 2, 1>, scalar_prefetch = 0 : i64, scratch_operands = 1 : i64, tpu.core_type = #tpu.core_type<tc>, window_params = [{transform_indices = @transform_0, window_bounds = array<i64: 8, 16, 2048>}, {pipeline_mode = #tpu.pipeline_mode<synchronous>, transform_indices = @transform_1, window_bounds = array<i64: 2, 2048>}, {pipeline_mode = #tpu.pipeline_mode<synchronous>, transform_indices = @transform_2, window_bounds = array<i64: 1, 2>}, {transform_indices = @transform_3, window_bounds = array<i64: 8, 2>}]} {
    %c0_i32 = arith.constant 0 : i32
    %0 = arith.cmpi eq, %arg1, %c0_i32 : i32
    %1 = arith.extui %0 : i1 to i32
    %c0_i32_0 = arith.constant 0 : i32
    %2 = arith.cmpi ne, %1, %c0_i32_0 : i32
    scf.if %2 {
      %cst_9 = arith.constant 0.000000e+00 : f32
      %12 = vector.broadcast %cst_9 : f32 to vector<8x2048xf32>
      %c0_10 = arith.constant 0 : index
      %c0_11 = arith.constant 0 : index
      %13 = vector.load %arg6[%c0_10, %c0_11] : memref<8x2048xf32, #tpu.memory_space<vmem>>, vector<8x2048xf32>
      tpu.vector_store %arg6[%c0_10, %c0_11], %12 {strides = array<i32>} : memref<8x2048xf32, #tpu.memory_space<vmem>>, vector<8x2048xf32>,
    } else {
    }
    %c0 = arith.constant 0 : index
    %c0_1 = arith.constant 0 : index
    %3 = vector.load %arg6[%c0, %c0_1] : memref<8x2048xf32, #tpu.memory_space<vmem>>, vector<8x2048xf32>
    %c0_2 = arith.constant 0 : index
    %c0_3 = arith.constant 0 : index
    %c0_4 = arith.constant 0 : index
    %4 = vector.load %arg2[%c0_2, %c0_3, %c0_4] : memref<8x16x2048xbf16, #tpu.memory_space<vmem>>, vector<8x16x2048xbf16>
    %5 = arith.extf %4 : vector<8x16x2048xbf16> to vector<8x16x2048xf32>
    %cst = arith.constant dense<0.000000e+00> : vector<8x2048xf32>
    %6 = vector.multi_reduction <add>, %5, %cst [1] : vector<8x16x2048xf32> to vector<8x2048xf32>
    %7 = arith.addf %3, %6 : vector<8x2048xf32>
    %c0_5 = arith.constant 0 : index
    %c0_6 = arith.constant 0 : index
    %8 = vector.load %arg6[%c0_5, %c0_6] : memref<8x2048xf32, #tpu.memory_space<vmem>>, vector<8x2048xf32>
    tpu.vector_store %arg6[%c0_5, %c0_6], %7 {strides = array<i32>} : memref<8x2048xf32, #tpu.memory_space<vmem>>, vector<8x2048xf32>,
    %c0_i32_7 = arith.constant 0 : i32
    %9 = arith.cmpi eq, %arg1, %c0_i32_7 : i32
    %10 = arith.extui %9 : i1 to i32
    %c0_i32_8 = arith.constant 0 : i32
    %11 = arith.cmpi ne, %10, %c0_i32_8 : i32
    scf.if %11 {
      %c0_9 = arith.constant 0 : index
      %c0_10 = arith.constant 0 : index
      %12 = vector.load %arg6[%c0_9, %c0_10] : memref<8x2048xf32, #tpu.memory_space<vmem>>, vector<8x2048xf32>
      %c0_11 = arith.constant 0 : index
      %c0_12 = arith.constant 0 : index
      %13 = vector.load %arg3[%c0_11, %c0_12] : memref<2x2048xf32, #tpu.memory_space<vmem>>, vector<2x2048xf32>
      %cst_13 = arith.constant dense<0.000000e+00> : vector<8x2xf32>
      %14 = tpu.matmul %12, %13, %cst_13 {dimension_numbers = #tpu.dot_dimension_numbers<[1], [1], [0], [0], [0, 0, 1, 0], [], []>} : vector<8x2048xf32>, vector<2x2048xf32>, vector<8x2xf32> -> vector<8x2xf32>
      %c0_14 = arith.constant 0 : index
      %c0_15 = arith.constant 0 : index
      %15 = vector.load %arg4[%c0_14, %c0_15] : memref<1x2xf32, #tpu.memory_space<vmem>>, vector<1x2xf32>
      %16 = vector.broadcast %15 : vector<1x2xf32> to vector<8x2xf32>
      %17 = arith.addf %14, %16 : vector<8x2xf32>
      %c0_16 = arith.constant 0 : index
      %c0_17 = arith.constant 0 : index
      %18 = vector.load %arg5[%c0_16, %c0_17] : memref<8x2xf32, #tpu.memory_space<vmem>>, vector<8x2xf32>
      tpu.vector_store %arg5[%c0_16, %c0_17], %17 {strides = array<i32>} : memref<8x2xf32, #tpu.memory_space<vmem>>, vector<8x2xf32>,
    } else {
    }
    return
  }
  func.func @transform_0(%arg0: i32, %arg1: i32) -> (i32, i32, i32) {
    %c0_i32 = arith.constant 0 : i32
    %c0_i32_0 = arith.constant 0 : i32
    return %arg0, %arg1, %c0_i32 : i32, i32, i32
  }
  func.func @transform_1(%arg0: i32, %arg1: i32) -> (i32, i32) {
    %c0_i32 = arith.constant 0 : i32
    %c0_i32_0 = arith.constant 0 : i32
    %c0_i32_1 = arith.constant 0 : i32
    return %c0_i32, %c0_i32_0 : i32, i32
  }
  func.func @transform_2(%arg0: i32, %arg1: i32) -> (i32, i32) {
    %c0_i32 = arith.constant 0 : i32
    %c0_i32_0 = arith.constant 0 : i32
    %c0_i32_1 = arith.constant 0 : i32
    return %c0_i32, %c0_i32_0 : i32, i32
  }
  func.func @transform_3(%arg0: i32, %arg1: i32) -> (i32, i32) {
    %c0_i32 = arith.constant 0 : i32
    %c0_i32_0 = arith.constant 0 : i32
    return %arg0, %c0_i32 : i32, i32
  }
}

</mosaic_0001>

<bundles_post_ra>
// kernel: tpu_custom_call.1
= control target key start
LH: loop header
LB: loop body
LE: loop exit
PB: predicated region body
PF: predicated region fallthrough
CT: control target
= control target key end

     0   :  { %8 = vsyncpa [#allocation4], 0  ;;  %s3424_s0 = inlined_call_operand.hbm [shape: bf16[16,16,2048], index: 0, kind: input, shape index: {}]   ;;  %s3425_s1 = inlined_call_operand.hbm [shape: f32[2,2048], index: 1, kind: input, shape index: {}]   ;;  %s3426_s2 = inlined_call_operand.vmem [shape: f32[1,2], index: 2, kind: input, shape index: {}]   ;;  %s3427_s3 = inlined_call_operand.vmem [shape: f32[16,2], index: 3, kind: output, shape index: {}]  }
   0x1   :  { %10 = vsyncpa [#allocation4 + $0x1], 0 }
   0x2   :  { %11 = vsyncpa [#allocation6], 0  ;;  %s2538_s12 = smov 0   ;;  %s2540_s13 = smov 0  }
   0x3   :  { %s2542_s14 = smov 0   ;;  %s2544_s15 = smov 0  }
   0x4   :  { %s2546_s16 = smov 0   ;;  %s2548_s17 = smov 0  }
   0x5 LB: > { %s2313_s18 = sadd.s32 4294967295, %s2513_s17   ;;  %s38_s19 = sadd.s32 1, %s2501_s14  ;;  %s2513_s17 = sphi %s2548_s17, %s17_s17   ;;  %s2509_s16 = sphi %s2546_s16, %s3488_s16   ;;  %s2505_s15 = sphi %s2544_s15, %s3487_s15   ;;  %s2501_s14 = sphi %s2542_s14, %s3486_s14   ;;  %s2497_s13 = sphi %s2540_s13, %s3485_s13   ;;  %s2493_s12 = sphi %s2538_s12, %s3484_s12  }
   0x6   : > { %p45_p0 = scmp.ne.s32.totalorder %s2501_s14, %s2497_s13  ;;  %p46_p1 = scmp.eq.s32.totalorder %s2513_s17, 0 }
   0x7   : > { %p51_p2 = scmp.ne.s32.totalorder %s2497_s13, %s2493_s12  ;;  %p2572_p3 = scmp.eq.s32.totalorder %s2313_s18, 0 }
   0x8   : > { %p2576_p4 = por %p46_p1, %p45_p0  ;;  %p2315_p5 = scmp.ge.s32.totalorder %s2513_s17, 1 }
   0x9   : > { %p2583_p6 = por %p2572_p3, %p51_p2  ;;  %p130_p7 = scmp.lt.s32.totalorder %s2513_s17, 3 }
   0xa   : > { %s142_s25 = sshll.u32 %s3425_s1, 4  ;;  %s2515_s27 = smov [#allocation5]   ;;  %s143_s25 = int_to_ptr.hbm [resolvable:$true] %s142_s25 }
   0xb   : > { %p2591_p8 = pnand %p2315_p5, %p130_p7  ;;  %s144_s28 = sshll.u32 %s2515_s27, 4  ;;  %s145_s28 = int_to_ptr.vmem [resolvable:$true] %s144_s28 }
   0xc   : > { %p2345_p10 = scmp.lt.s32.totalorder %s2513_s17, 2  ;;  %s29_s30 = sadd.s32 1, %s2509_s16 }
   0xd   : > { %p2336_p9 = pneg %p2591_p8  ;;  %p31_p13 = scmp.ge.s32.totalorder %s29_s30, 2 }
   0xe   : > { %p2602_p12 = pnand %p2345_p10, %p2576_p4  ;;  %s158_s4 = sand.u32 1, %s2501_s14  }
   0xf   : > { %p2337_p11 = pnand %p2336_p9, %p2572_p3  ;;  %s2329_s5 = sshll.u32 %s2509_s16, 10 }
  0x10   : > { %s3490_s30 = smov (%p31_p13, %s29_s30), 0  ;;  %s2318_s6 = sshll.u32 %s158_s4, 10 }
  0x11   : > { %2339 = dma.hbm_to_vmem [thread:$0]  (!%p2337_p11), %s143_s25, 512, %s145_s28, [#allocation6]  }
  0x12   : > { %s33_s7 = ssub.s32 %s2509_s16, %s3490_s30  ;;  %s171_s10 = scalar_lea.hbm %s3424_s0, %s2329_s5 }
  0x13   : > { %p36_p0 = scmp.eq.s32.totalorder %s33_s7, 0  ;;  %s172_s11 = sshll.u32 %s171_s10, 4  ;;  %s173_s11 = int_to_ptr.hbm [resolvable:$true] %s172_s11 }
  0x14   : > { %s162_s12 = scalar_lea.vmem [#allocation3], %s2318_s6  ;;  %s159_s23 = scalar_lea.sflag [#allocation4], %s158_s4 }
  0x15   : > { %s174_s18 = sshll.u32 %s162_s12, 4  ;;  %s2516_s24 = smov 1024   ;;  %s175_s18 = int_to_ptr.vmem [resolvable:$true] %s174_s18 }
  0x16   : > { %s2619_s21 = scalar_select %p36_p0, %s2501_s14, %s38_s19  }
  0x17   : > { %s2517_s25 = smov 64   ;;  %186 = sbr.rel (%p2591_p8) target bundleno = 495 (0x1ef), region = 32 }
  0x18   : > { %2343 = dma.hbm_to_vmem [thread:$0]  (!%p2602_p12), %s173_s11, 16384, %s175_s18, %s159_s23, %s2516_s24, %s2516_s24, %s2517_s25  }
  0x1c   : > { %s188_s27 = sand.u32 1, %s2497_s13  }
  0x1d   : > { %s2323_s28 = sshll.u32 %s188_s27, 10  ;;  %s189_s5 = scalar_lea.sflag [#allocation4], %s188_s27 }
  0x1e   : > { %s2626_s6 = scalar_lea.vmem [#allocation3], %s2323_s28 }
  0x1f   : > { %2484 = dma.done.wait (%p2583_p6), %s189_s5, 16384  }
  0x20   : > { %2486 = vsyncadd (%p2583_p6), %s189_s5, 4294950912 }
  0x21   : > { %2488 = dma.done.wait (%p2572_p3), [#allocation6], 512  }
  0x22   : > { %2490 = vsyncadd (%p2572_p3), [#allocation6], 4294966784  ;;  %v1856_v0 = vld [vmem:[#allocation5] sm:$0xff]  ;;  %v2637_v1 = vld [vmem:[%s2626_s6 + $0x8] sm:$0xff]  ;;  %vm1670_vm0 = vcmask 1041409   ;;  %vm1672_vm1 = vcmask 1042434  }
  0x23   : > { %v2640_v2 = vld [vmem:[%s2626_s6 + $0x48] sm:$0xff]  ;;  %1868 = vst [vmem:[#allocation1] ss:$4 sm:$0xff] %v1856_v0  ;;  %v392_v6 = vunpack.c.l.bf16 %v2637_v1  ;;  %v2704_v42 = vld [vmem:[%s2626_s6] sm:$0xff]  ;;  %v1858_v48 = vld [vmem:[#allocation5 + $0x10] sm:$0xff]  ;;  %vm1674_vm2 = vcmask 1043459  }
  0x24   : > { %v2643_v3 = vld [vmem:[%s2626_s6 + $0x88] sm:$0xff]  ;;  %v408_v7 = vunpack.c.l.bf16 %v2640_v2  ;;  %v2707_v43 = vld [vmem:[%s2626_s6 + $0x40] sm:$0xff]  ;;  %v390_v54 = vunpack.c.l.bf16 %v2704_v42  ;;  %vm1676_vm3 = vcmask 1044484   ;;  %vm1678_vm4 = vcmask 1045509   ;;  %p222_p1 = scmp.lt.s32.totalorder %s2505_s15, 1 }
  0x25   : > { %v2646_v4 = vld [vmem:[%s2626_s6 + $0xc8] sm:$0xff]  ;;  %v424_v13 = vunpack.c.l.bf16 %v2643_v3  ;;  %v406_v59 = vunpack.c.l.bf16 %v2707_v43  ;;  %vm1680_vm5 = vcmask 1046534   ;;  %vm1682_vm6 = vcmask 1047559  }
  0x26   : > { %v2649_v5 = vld [vmem:[%s2626_s6 + $0x108] sm:$0xff]  ;;  %v440_v14 = vunpack.c.l.bf16 %v2646_v4  ;;  %v660_v23 = vadd.f32 %v408_v7, %v392_v6  ;;  %s3492_s15 = smov (!%p222_p1, %s2505_s15), 1  ;;  %vm2225_vm7 = vcmask 15360  }
  0x27   : > { %v2656_v10 = vld [vmem:[%s2626_s6 + $0x148] sm:$0xff]  ;;  %v456_v15 = vunpack.c.l.bf16 %v2649_v5  ;;  %s2325_s22 = sshll.u32 %s3492_s15, 3 }
  0x28   : > { %v2659_v11 = vld [vmem:[%s2626_s6 + $0x188] sm:$0xff]  ;;  %v472_v20 = vunpack.c.l.bf16 %v2656_v10  ;;  %v772_v30 = vadd.f32 %v440_v14, %v424_v13  ;;  %v661_v36 = vrot.slane %v660_v23, 4  ;;  %s225_s4 = scalar_lea.vmem %s3427_s3, %s2325_s22 }
  0x29   : > { %v2662_v12 = vld [vmem:[%s2626_s6 + $0x1c8] sm:$0xff]  ;;  %v488_v21 = vunpack.c.l.bf16 %v2659_v11 }
  0x2a   : > { %v2669_v17 = vld [vmem:[%s2626_s6 + $0x208] sm:$0xff]  ;;  %v504_v22 = vunpack.c.l.bf16 %v2662_v12  ;;  %v773_v40 = vrot.slane %v772_v30, 4  ;;  %v884_v41 = vadd.f32 %v472_v20, %v456_v15  ;;  %v662_v44 = vadd.f32 %v661_v36, %v660_v23  ;;  %v1871_v50 = vld.sshfl [vmem:[#allocation1] sm:$0xff pattern:$0x73625140] }
  0x2b   : > { %v2672_v18 = vld [vmem:[%s2626_s6 + $0x248] sm:$0xff]  ;;  %v520_v27 = vunpack.c.l.bf16 %v2669_v17  ;;  %1920 = vmatpush.xpose.msra.mxu0 %v1871_v50  ;;  %v1874_v55 = vld.sshfl [vmem:[#allocation1 + $0x18] sm:$0xff pattern:$0x73625140] }
  0x2c   : > { %v2675_v19 = vld [vmem:[%s2626_s6 + $0x288] sm:$0xff]  ;;  %v536_v28 = vunpack.c.l.bf16 %v2672_v18  ;;  %v996_v45 = vadd.f32 %v504_v22, %v488_v21  ;;  %v774_v51 = vadd.f32 %v773_v40, %v772_v30  ;;  %v663_v56 = vrot.slane %v662_v44, 2  ;;  %1980 = vmatpush.xpose.msra.mxu3 %v1874_v55  ;;  %v1872_v14 = vld.sshfl [vmem:[#allocation1 + $0x8] sm:$0xff pattern:$0x73625140] }
  0x2d   : > { %v2681_v24 = vld [vmem:[%s2626_s6 + $0x2c8] sm:$0xff]  ;;  %v552_v29 = vunpack.c.l.bf16 %v2675_v19  ;;  %v885_v57 = vrot.slane %v884_v41, 4  ;;  %1940 = vmatpush.xpose.msra.mxu1 %v1872_v14 }
  0x2e   : > { %v2684_v25 = vld [vmem:[%s2626_s6 + $0x308] sm:$0xff]  ;;  %v568_v33 = vunpack.c.l.bf16 %v2681_v24  ;;  %v1108_v46 = vadd.f32 %v536_v28, %v520_v27  ;;  %v997_v58 = vrot.slane %v996_v45, 4  ;;  %v775_v60 = vrot.slane %v774_v51, 2 }
  0x2f   : > { %v2687_v26 = vld [vmem:[%s2626_s6 + $0x348] sm:$0xff]  ;;  %v584_v34 = vunpack.c.l.bf16 %v2684_v25  ;;  %v664_v0 = vadd.f32 %v663_v56, %v662_v44  ;;  %v886_v6 = vadd.f32 %v885_v57, %v884_v41 }
  0x30   : > { %v2693_v31 = vld [vmem:[%s2626_s6 + $0x388] sm:$0xff]  ;;  %v600_v35 = vunpack.c.l.bf16 %v2687_v26  ;;  %v1220_v47 = vadd.f32 %v568_v33, %v552_v29  ;;  %v1109_v61 = vrot.slane %v1108_v46, 4  ;;  %v998_v7 = vadd.f32 %v997_v58, %v996_v45 }
  0x31   : > { %v2696_v32 = vld [vmem:[%s2626_s6 + $0x3c8] sm:$0xff]  ;;  %v616_v38 = vunpack.c.l.bf16 %v2693_v31  ;;  %v776_v15 = vadd.f32 %v775_v60, %v774_v51  ;;  %v665_v23 = vrot.slane %v664_v0, 1  ;;  %v887_v27 = vrot.slane %v886_v6, 2  ;;  %v2723_v60 = vld [vmem:[%s2626_s6 + $0x140] sm:$0xff] }
  0x32   : > { %v1857_v37 = vld [vmem:[#allocation5 + $0x8] sm:$0xff]  ;;  %v632_v39 = vunpack.c.l.bf16 %v2696_v32  ;;  %v1332_v52 = vadd.f32 %v600_v35, %v584_v34  ;;  %v1221_v62 = vrot.slane %v1220_v47, 4  ;;  %v1110_v20 = vadd.f32 %v1109_v61, %v1108_v46  ;;  %v2726_v61 = vld [vmem:[%s2626_s6 + $0x180] sm:$0xff] }
  0x33   : > { %1870 = vst [vmem:[#allocation1 + $0x20] ss:$4 sm:$0xff] %v1857_v37  ;;  %v1873_v49 = vld.sshfl [vmem:[#allocation1 + $0x10] sm:$0xff pattern:$0x73625140]  ;;  %v999_v28 = vrot.slane %v998_v7, 2 }
  0x34   : > { %v1444_v53 = vadd.f32 %v632_v39, %v616_v38  ;;  %1960 = vmatpush.xpose.msra.mxu2 %v1873_v49  ;;  %v1333_v63 = vrot.slane %v1332_v52, 4  ;;  %v1222_v21 = vadd.f32 %v1221_v62, %v1220_v47  ;;  %1879 = vst [vmem:[#allocation1] ss:$4 sm:$0xff] %v1858_v48  ;;  %v777_v33 = vrot.slane %v776_v15, 1  ;;  %v2712_v37 = vld [vmem:[%s2626_s6 + $0x80] sm:$0xff] }
  0x35   : > { %v1111_v34 = vrot.slane %v1110_v20, 2  ;;  %v666_v38 = vadd.f32 %v665_v23, %v664_v0  ;;  %v888_v39 = vadd.f32 %v887_v27, %v886_v6  ;;  %v1000_v40 = vadd.f32 %v999_v28, %v998_v7  ;;  %v2715_v48 = vld [vmem:[%s2626_s6 + $0xc0] sm:$0xff] }
  0x36   : > { %v1445_v13 = vrot.slane %v1444_v53, 4  ;;  %v1334_v22 = vadd.f32 %v1333_v63, %v1332_v52  ;;  %v1223_v35 = vrot.slane %v1222_v21, 2  ;;  %v778_v44 = vadd.f32 %v777_v33, %v776_v15  ;;  %v2718_v52 = vld [vmem:[%s2626_s6 + $0x100] sm:$0xff] }
  0x37   : > { %v1112_v45 = vadd.f32 %v1111_v34, %v1110_v20  ;;  %v889_v49 = vrot.slane %v888_v39, 1  ;;  %v1001_v50 = vrot.slane %v1000_v40, 1  ;;  %v2729_v6 = vld [vmem:[%s2626_s6 + $0x1c0] sm:$0xff]  ;;  %v438_v14 = vunpack.c.l.bf16 %v2715_v48 }
  0x38   : > { %v1446_v29 = vadd.f32 %v1445_v13, %v1444_v53  ;;  %v1335_v36 = vrot.slane %v1334_v22, 2  ;;  %v1224_v46 = vadd.f32 %v1223_v35, %v1222_v21  ;;  %v422_v53 = vunpack.c.l.bf16 %v2712_v37  ;;  %v2732_v7 = vld [vmem:[%s2626_s6 + $0x200] sm:$0xff] }
  0x39   : > { %v1113_v55 = vrot.slane %v1112_v45, 1  ;;  %v1691_v58 = vsel %vm1670_vm0, %v778_v44, %v666_v38  ;;  %v890_v62 = vadd.f32 %v889_v49, %v888_v39  ;;  %v1002_v63 = vadd.f32 %v1001_v50, %v1000_v40  ;;  %v2735_v13 = vld [vmem:[%s2626_s6 + $0x240] sm:$0xff] }
  0x3a   : > { %v1877_v30 = vld.sshfl [vmem:[#allocation1 + $0x30] sm:$0xff pattern:$0x73625140]  ;;  %v1447_v41 = vrot.slane %v1446_v29, 2  ;;  %v1336_v47 = vadd.f32 %v1335_v36, %v1334_v22  ;;  %v1225_v56 = vrot.slane %v1224_v46, 1  ;;  %v2739_v22 = vld [vmem:[%s2626_s6 + $0x280] sm:$0xff]  ;;  %v454_v28 = vunpack.c.l.bf16 %v2718_v52 }
  0x3b   : > { %2040 = vmatpush.xpose.msrb.mxu2 %v1877_v30  ;;  %v1114_v15 = vadd.f32 %v1113_v55, %v1112_v45  ;;  %v2742_v23 = vld [vmem:[%s2626_s6 + $0x2c0] sm:$0xff]  ;;  %v1692_v30 = vsel %vm1672_vm1, %v890_v62, %v1691_v58  ;;  %v470_v36 = vunpack.c.l.bf16 %v2723_v60  ;;  %v486_v38 = vunpack.c.l.bf16 %v2726_v61 }
  0x3c   : > { %v1448_v51 = vadd.f32 %v1447_v41, %v1446_v29  ;;  %v1337_v57 = vrot.slane %v1336_v47, 1  ;;  %v1226_v20 = vadd.f32 %v1225_v56, %v1224_v46  ;;  %v2745_v27 = vld [vmem:[%s2626_s6 + $0x300] sm:$0xff]  ;;  %v1693_v39 = vsel %vm1674_vm2, %v1002_v63, %v1692_v30 }
  0x3d   : > { %3449 = vst [vmem:[#allocation9_spill] sm:$0xff] %v2745_v27  ;;  %v2750_v33 = vld [vmem:[%s2626_s6 + $0x340] sm:$0xff]  ;;  %v502_v40 = vunpack.c.l.bf16 %v2729_v6  ;;  %v518_v41 = vunpack.c.l.bf16 %v2732_v7  ;;  %v534_v44 = vunpack.c.l.bf16 %v2735_v13  ;;  %v1694_v45 = vsel %vm1676_vm3, %v1114_v15, %v1693_v39 }
  0x3e   : > { %v1449_v0 = vrot.slane %v1448_v51, 1  ;;  %v1338_v21 = vadd.f32 %v1337_v57, %v1336_v47  ;;  %3450 = vst [vmem:[#allocation10_spill] sm:$0xff] %v2750_v33  ;;  %v2753_v34 = vld [vmem:[%s2626_s6 + $0x380] sm:$0xff]  ;;  %v550_v46 = vunpack.c.l.bf16 %v2739_v22  ;;  %v566_v47 = vunpack.c.l.bf16 %v2742_v23 }
  0x3f   : > { %3451 = vst [vmem:[#allocation11_spill] sm:$0xff] %v2753_v34  ;;  %v2756_v35 = vld [vmem:[%s2626_s6 + $0x3c0] sm:$0xff]  ;;  %v582_v49 = vunpack.c.l.bf16 %v2745_v27  ;;  %v1695_v50 = vsel %vm1678_vm4, %v1226_v20, %v1694_v45  ;;  %v614_v55 = vunpack.c.l.bf16 %v2753_v34  ;;  %v646_v58 = vadd.f32 %v406_v59, %v390_v54 }
  0x40   : > { %v1450_v29 = vadd.f32 %v1449_v0, %v1448_v51  ;;  %3452 = vst [vmem:[#allocation12_spill] sm:$0xff] %v2756_v35  ;;  %v598_v51 = vunpack.c.l.bf16 %v2750_v33  ;;  %v630_v56 = vunpack.c.l.bf16 %v2756_v35  ;;  %v1696_v57 = vsel %vm1680_vm5, %v1338_v21, %v1695_v50 }
  0x41   : > { %v758_v62 = vadd.f32 %v438_v14, %v422_v53  ;;  %v870_v63 = vadd.f32 %v470_v36, %v454_v28  ;;  %v982_v15 = vadd.f32 %v502_v40, %v486_v38  ;;  %v1094_v30 = vadd.f32 %v534_v44, %v518_v41 }
  0x42   : > { %v1697_v0 = vsel %vm1682_vm6, %v1450_v29, %v1696_v57  ;;  %v1206_v20 = vadd.f32 %v566_v47, %v550_v46  ;;  %v647_v39 = vrot.slane %v646_v58, 4  ;;  %v1318_v9 = vadd.f32 %v598_v51, %v582_v49 }
  0x43   : > { %1961 = vmatmul.f32.vlgmr.msra.gmra.mxu2 %v1697_v0  ;;  %v759_v45 = vrot.slane %v758_v62, 4  ;;  %v871_v16 = vrot.slane %v870_v63, 4  ;;  %v983_v8 = vrot.slane %v982_v15, 4  ;;  %v1095_v35 = vrot.slane %v1094_v30, 4 }
  0x44   : > { %v1207_v21 = vrot.slane %v1206_v20, 4  ;;  %v1430_v50 = vadd.f32 %v630_v56, %v614_v55  ;;  %v648_v34 = vadd.f32 %v647_v39, %v646_v58  ;;  %v1319_v54 = vrot.slane %v1318_v9, 4  ;;  %v1875_v56 = vld.sshfl [vmem:[#allocation1 + $0x20] sm:$0xff pattern:$0x73625140] }
  0x45   : > { %v760_v33 = vadd.f32 %v759_v45, %v758_v62  ;;  %v872_v27 = vadd.f32 %v871_v16, %v870_v63  ;;  %v984_v59 = vadd.f32 %v983_v8, %v982_v15  ;;  %v1096_v53 = vadd.f32 %v1095_v35, %v1094_v30  ;;  %2000 = vmatpush.xpose.msrb.mxu0 %v1875_v56  ;;  %v1878_v35 = vld.sshfl [vmem:[#allocation1 + $0x38] sm:$0xff pattern:$0x73625140] }
  0x46   : > { %v1208_v14 = vadd.f32 %v1207_v21, %v1206_v20  ;;  %v1431_v28 = vrot.slane %v1430_v50, 4  ;;  %v649_v29 = vrot.slane %v648_v34, 2  ;;  %v1320_v40 = vadd.f32 %v1319_v54, %v1318_v9  ;;  %2060 = vmatpush.xpose.msrb.mxu3 %v1878_v35 }
  0x47   : > { %v761_v36 = vrot.slane %v760_v33, 2  ;;  %v873_v38 = vrot.slane %v872_v27, 2  ;;  %v985_v41 = vrot.slane %v984_v59, 2  ;;  %v1097_v44 = vrot.slane %v1096_v53, 2 }
  0x48   : > { %v1209_v46 = vrot.slane %v1208_v14, 2  ;;  %v1432_v47 = vadd.f32 %v1431_v28, %v1430_v50  ;;  %v650_v49 = vadd.f32 %v649_v29, %v648_v34  ;;  %v1321_v55 = vrot.slane %v1320_v40, 2 }
  0x49   : > { %v762_v51 = vadd.f32 %v761_v36, %v760_v33  ;;  %v874_v57 = vadd.f32 %v873_v38, %v872_v27  ;;  %v986_v58 = vadd.f32 %v985_v41, %v984_v59  ;;  %v1098_v16 = vadd.f32 %v1097_v44, %v1096_v53 }
  0x4a   : > { %v1210_v62 = vadd.f32 %v1209_v46, %v1208_v14  ;;  %v1433_v8 = vrot.slane %v1432_v47, 2  ;;  %v651_v63 = vrot.slane %v650_v49, 1  ;;  %v1322_v30 = vadd.f32 %v1321_v55, %v1320_v40 }
  0x4b   : > { %v763_v0 = vrot.slane %v762_v51, 1  ;;  %v875_v15 = vrot.slane %v874_v57, 1  ;;  %v987_v9 = vrot.slane %v986_v58, 1  ;;  %v1099_v20 = vrot.slane %v1098_v16, 1 }
  0x4c   : > { %v1211_v39 = vrot.slane %v1210_v62, 1  ;;  %v1434_v45 = vadd.f32 %v1433_v8, %v1432_v47  ;;  %v652_v34 = vadd.f32 %v651_v63, %v650_v49  ;;  %v1323_v21 = vrot.slane %v1322_v30, 1 }
  0x4d   : > { %v764_v33 = vadd.f32 %v763_v0, %v762_v51  ;;  %v876_v27 = vadd.f32 %v875_v15, %v874_v57  ;;  %v988_v50 = vadd.f32 %v987_v9, %v986_v58  ;;  %v1100_v54 = vadd.f32 %v1099_v20, %v1098_v16 }
  0x4e   : > { %v1212_v59 = vadd.f32 %v1211_v39, %v1210_v62  ;;  %v1435_v53 = vrot.slane %v1434_v45, 1  ;;  %v1324_v14 = vadd.f32 %v1323_v21, %v1322_v30  ;;  %v441_v29 = vunpack.c.h.bf16 %v2646_v4 }
  0x4f   : > { %v1671_v28 = vsel %vm1670_vm0, %v764_v33, %v652_v34  ;;  %v457_v36 = vunpack.c.h.bf16 %v2649_v5  ;;  %v473_v41 = vunpack.c.h.bf16 %v2656_v10  ;;  %v489_v44 = vunpack.c.h.bf16 %v2659_v11 }
  0x50   : > { %v1436_v38 = vadd.f32 %v1435_v53, %v1434_v45  ;;  %v1673_v40 = vsel %vm1672_vm1, %v876_v27, %v1671_v28  ;;  %v505_v47 = vunpack.c.h.bf16 %v2662_v12  ;;  %v521_v49 = vunpack.c.h.bf16 %v2669_v17 }
  0x51   : > { %v1675_v46 = vsel %vm1674_vm2, %v988_v50, %v1673_v40  ;;  %v537_v51 = vunpack.c.h.bf16 %v2672_v18  ;;  %v553_v4 = vunpack.c.h.bf16 %v2675_v19  ;;  %v569_v5 = vunpack.c.h.bf16 %v2681_v24 }
  0x52   : > { %v1677_v57 = vsel %vm1676_vm3, %v1100_v54, %v1675_v46  ;;  %v585_v55 = vunpack.c.h.bf16 %v2684_v25  ;;  %v601_v11 = vunpack.c.h.bf16 %v2687_v26  ;;  %v617_v56 = vunpack.c.h.bf16 %v2693_v31 }
  0x53   : > { %v1679_v10 = vsel %vm1678_vm4, %v1212_v59, %v1677_v57  ;;  %v633_v12 = vunpack.c.h.bf16 %v2696_v32  ;;  %v3453_v18 = vunpack.c.h.bf16 %v2637_v1  ;;  %v3454_v58 = vunpack.c.h.bf16 %v2640_v2  ;;  %v1876_v57 = vld.sshfl [vmem:[#allocation1 + $0x28] sm:$0xff pattern:$0x73625140] }
  0x54   : > { %v1681_v17 = vsel %vm1680_vm5, %v1324_v14, %v1679_v10  ;;  %v3455_v19 = vunpack.c.h.bf16 %v2643_v3  ;;  %v891_v62 = vadd.f32 %v473_v41, %v457_v36  ;;  %v1003_v8 = vadd.f32 %v505_v47, %v489_v44  ;;  %2020 = vmatpush.xpose.msrb.mxu1 %v1876_v57 }
  0x55   : > { %v667_v16 = vadd.f32 %v3454_v58, %v3453_v18  ;;  %v1683_v25 = vsel %vm1682_vm6, %v1436_v38, %v1681_v17  ;;  %v1115_v35 = vadd.f32 %v537_v51, %v521_v49  ;;  %v1227_v26 = vadd.f32 %v569_v5, %v553_v4  ;;  %v1859_v51 = vld [vmem:[#allocation5 + $0x18] sm:$0xff] }
  0x56   : > { %v779_v24 = vadd.f32 %v441_v29, %v3455_v19  ;;  %1921 = vmatmul.f32.vlgmr.msra.gmra.mxu0 %v1683_v25  ;;  %v892_v32 = vrot.slane %v891_v62, 4  ;;  %v1339_v0 = vadd.f32 %v601_v11, %v585_v55  ;;  %v1004_v15 = vrot.slane %v1003_v8, 4  ;;  %1880 = vst [vmem:[#allocation1 + $0x20] ss:$4 sm:$0xff] %v1859_v51 }
  0x57   : > { %v668_v31 = vrot.slane %v667_v16, 4  ;;  %v1116_v30 = vrot.slane %v1115_v35, 4  ;;  %v1228_v1 = vrot.slane %v1227_v26, 4  ;;  %v1451_v9 = vadd.f32 %v633_v12, %v617_v56 }
  0x58   : > { %v780_v63 = vrot.slane %v779_v24, 4  ;;  %v893_v39 = vadd.f32 %v892_v32, %v891_v62  ;;  %v1340_v3 = vrot.slane %v1339_v0, 4  ;;  %v1005_v45 = vadd.f32 %v1004_v15, %v1003_v8 }
  0x59   : > { %v669_v2 = vadd.f32 %v668_v31, %v667_v16  ;;  %v1117_v34 = vadd.f32 %v1116_v30, %v1115_v35  ;;  %v1229_v33 = vadd.f32 %v1228_v1, %v1227_v26  ;;  %v1452_v27 = vrot.slane %v1451_v9, 4 }
  0x5a   : > { %v781_v20 = vadd.f32 %v780_v63, %v779_v24  ;;  %v894_v54 = vrot.slane %v893_v39, 2  ;;  %v1341_v59 = vadd.f32 %v1340_v3, %v1339_v0  ;;  %v1006_v53 = vrot.slane %v1005_v45, 2 }
  0x5b   : > { %v670_v21 = vrot.slane %v669_v2, 2  ;;  %v1118_v14 = vrot.slane %v1117_v34, 2  ;;  %v1230_v28 = vrot.slane %v1229_v33, 2  ;;  %v1453_v29 = vadd.f32 %v1452_v27, %v1451_v9  ;;  %v3458_v27 = vld [vmem:[#allocation11_spill] sm:$0xff] }
  0x5c   : > { %v782_v50 = vrot.slane %v781_v20, 2  ;;  %v895_v40 = vadd.f32 %v894_v54, %v893_v39  ;;  %v1342_v41 = vrot.slane %v1341_v59, 2  ;;  %v1007_v44 = vadd.f32 %v1006_v53, %v1005_v45 }
  0x5d   : > { %v671_v36 = vadd.f32 %v670_v21, %v669_v2  ;;  %v1119_v46 = vadd.f32 %v1118_v14, %v1117_v34  ;;  %v1231_v47 = vadd.f32 %v1230_v28, %v1229_v33  ;;  %v1454_v49 = vrot.slane %v1453_v29, 2  ;;  %v3456_v34 = vld [vmem:[#allocation9_spill] sm:$0xff]  ;;  %v3457_v33 = vld [vmem:[#allocation10_spill] sm:$0xff] }
  0x5e   : > { %v783_v38 = vadd.f32 %v782_v50, %v781_v20  ;;  %v896_v55 = vrot.slane %v895_v40, 1  ;;  %v1343_v10 = vadd.f32 %v1342_v41, %v1341_v59  ;;  %v1008_v11 = vrot.slane %v1007_v44, 1  ;;  %v3459_v50 = vld [vmem:[#allocation12_spill] sm:$0xff] }
  0x5f   : > { %v672_v4 = vrot.slane %v671_v36, 1  ;;  %v1120_v56 = vrot.slane %v1119_v46, 1  ;;  %v1232_v12 = vrot.slane %v1231_v47, 1  ;;  %v1455_v17 = vadd.f32 %v1454_v49, %v1453_v29 }
  0x60   : > { %v784_v5 = vrot.slane %v783_v38, 1  ;;  %v897_v16 = vadd.f32 %v896_v55, %v895_v40  ;;  %v1344_v19 = vrot.slane %v1343_v10, 1  ;;  %v1009_v24 = vadd.f32 %v1008_v11, %v1007_v44 }
  0x61   : > { %v673_v18 = vadd.f32 %v672_v4, %v671_v36  ;;  %v1121_v62 = vadd.f32 %v1120_v56, %v1119_v46  ;;  %v1233_v25 = vadd.f32 %v1232_v12, %v1231_v47  ;;  %v1456_v8 = vrot.slane %v1455_v17, 1 }
  0x62   : > { %v785_v58 = vadd.f32 %v784_v5, %v783_v38  ;;  %v1345_v35 = vadd.f32 %v1344_v19, %v1343_v10  ;;  %v391_v31 = vunpack.c.h.bf16 %v2704_v42  ;;  %v407_v63 = vunpack.c.h.bf16 %v2707_v43 }
  0x63   : > { %v1457_v32 = vadd.f32 %v1456_v8, %v1455_v17  ;;  %v423_v15 = vunpack.c.h.bf16 %v2712_v37  ;;  %v439_v30 = vunpack.c.h.bf16 %v2715_v48  ;;  %v455_v9 = vunpack.c.h.bf16 %v2718_v52 }
  0x64   : > { %v1698_v26 = vsel %vm1670_vm0, %v785_v58, %v673_v18  ;;  %v471_v2 = vunpack.c.h.bf16 %v2723_v60  ;;  %v487_v20 = vunpack.c.h.bf16 %v2726_v61  ;;  %v503_v42 = vunpack.c.h.bf16 %v2729_v6 }
  0x65   : > { %v1699_v0 = vsel %vm1672_vm1, %v897_v16, %v1698_v26  ;;  %v519_v43 = vunpack.c.h.bf16 %v2732_v7  ;;  %v535_v3 = vunpack.c.h.bf16 %v2735_v13  ;;  %v551_v48 = vunpack.c.h.bf16 %v2739_v22 }
  0x66   : > { %v1700_v1 = vsel %vm1674_vm2, %v1009_v24, %v1699_v0  ;;  %v567_v45 = vunpack.c.h.bf16 %v2742_v23  ;;  %v583_v52 = vunpack.c.h.bf16 %v3456_v34  ;;  %v599_v61 = vunpack.c.h.bf16 %v3457_v33  ;;  %v2834_v34 = vld [vmem:[%s2626_s6 + $0x98] sm:$0xff] }
  0x67   : > { %v1701_v39 = vsel %vm1676_vm3, %v1121_v62, %v1700_v1  ;;  %v615_v21 = vunpack.c.h.bf16 %v3458_v27  ;;  %v631_v6 = vunpack.c.h.bf16 %v3459_v50  ;;  %v653_v54 = vadd.f32 %v407_v63, %v391_v31  ;;  %v2843_v50 = vld [vmem:[%s2626_s6 + $0x158] sm:$0xff] }
  0x68   : > { %v1702_v37 = vsel %vm1678_vm4, %v1233_v25, %v1701_v39  ;;  %v765_v13 = vadd.f32 %v439_v30, %v423_v15  ;;  %v877_v59 = vadd.f32 %v471_v2, %v455_v9  ;;  %v989_v53 = vadd.f32 %v503_v42, %v487_v20  ;;  %v2828_v42 = vld [vmem:[%s2626_s6 + $0x18] sm:$0xff] }
  0x69   : > { %v1703_v60 = vsel %vm1680_vm5, %v1345_v35, %v1702_v37  ;;  %v1101_v22 = vadd.f32 %v535_v3, %v519_v43  ;;  %v1213_v14 = vadd.f32 %v567_v45, %v551_v48  ;;  %v1325_v23 = vadd.f32 %v599_v61, %v583_v52  ;;  %v2831_v43 = vld [vmem:[%s2626_s6 + $0x58] sm:$0xff] }
  0x6a   : > { %v1704_v7 = vsel %vm1682_vm6, %v1457_v32, %v1703_v60  ;;  %v654_v28 = vrot.slane %v653_v54, 4  ;;  %v766_v29 = vrot.slane %v765_v13, 4  ;;  %v878_v36 = vrot.slane %v877_v59, 4  ;;  %v1883_v32 = vld.sshfl [vmem:[#allocation1 + $0x10] sm:$0xff pattern:$0x73625140] }
  0x6b   : > { %1981 = vmatmul.f32.vlgmr.msra.gmra.mxu3 %v1704_v7  ;;  %v1437_v38 = vadd.f32 %v631_v6, %v615_v21  ;;  %v990_v40 = vrot.slane %v989_v53, 4  ;;  %v1102_v41 = vrot.slane %v1101_v22, 4  ;;  %v1214_v44 = vrot.slane %v1213_v14, 4  ;;  %2120 = vmatpush.xpose.msra.mxu2 %v1883_v32  ;;  %v2837_v52 = vld [vmem:[%s2626_s6 + $0xd8] sm:$0xff] }
  0x6c   : > { %v1326_v46 = vrot.slane %v1325_v23, 4  ;;  %v655_v47 = vadd.f32 %v654_v28, %v653_v54  ;;  %v767_v49 = vadd.f32 %v766_v29, %v765_v13  ;;  %v879_v51 = vadd.f32 %v878_v36, %v877_v59  ;;  %v2840_v60 = vld [vmem:[%s2626_s6 + $0x118] sm:$0xff] }
  0x6d   : > { %v1438_v57 = vrot.slane %v1437_v38, 4  ;;  %v991_v4 = vadd.f32 %v990_v40, %v989_v53  ;;  %v1103_v5 = vadd.f32 %v1102_v41, %v1101_v22  ;;  %v1215_v55 = vadd.f32 %v1214_v44, %v1213_v14  ;;  %v2846_v6 = vld [vmem:[%s2626_s6 + $0x198] sm:$0xff] }
  0x6e   : > { %v1327_v10 = vadd.f32 %v1326_v46, %v1325_v23  ;;  %v656_v11 = vrot.slane %v655_v47, 2  ;;  %v768_v56 = vrot.slane %v767_v49, 2  ;;  %v880_v12 = vrot.slane %v879_v51, 2  ;;  %v2849_v7 = vld [vmem:[%s2626_s6 + $0x1d8] sm:$0xff] }
  0x6f   : > { %v1439_v17 = vadd.f32 %v1438_v57, %v1437_v38  ;;  %v992_v18 = vrot.slane %v991_v4, 2  ;;  %v1104_v58 = vrot.slane %v1103_v5, 2  ;;  %v1216_v16 = vrot.slane %v1215_v55, 2  ;;  %v2853_v59 = vld [vmem:[%s2626_s6 + $0x218] sm:$0xff] }
  0x70   : > { %v1328_v19 = vrot.slane %v1327_v10, 2  ;;  %v657_v24 = vadd.f32 %v656_v11, %v655_v47  ;;  %v769_v62 = vadd.f32 %v768_v56, %v767_v49  ;;  %v881_v25 = vadd.f32 %v880_v12, %v879_v51  ;;  %v2856_v53 = vld [vmem:[%s2626_s6 + $0x258] sm:$0xff] }
  0x71   : > { %v1440_v8 = vrot.slane %v1439_v17, 2  ;;  %v993_v35 = vadd.f32 %v992_v18, %v991_v4  ;;  %v1105_v26 = vadd.f32 %v1104_v58, %v1103_v5  ;;  %v1217_v31 = vadd.f32 %v1216_v16, %v1215_v55  ;;  %v2859_v22 = vld [vmem:[%s2626_s6 + $0x298] sm:$0xff] }
  0x72   : > { %v1329_v63 = vadd.f32 %v1328_v19, %v1327_v10  ;;  %v658_v0 = vrot.slane %v657_v24, 1  ;;  %v770_v15 = vrot.slane %v769_v62, 1  ;;  %v882_v30 = vrot.slane %v881_v25, 1  ;;  %v2865_v29 = vld [vmem:[%s2626_s6 + $0x2d8] sm:$0xff] }
  0x73   : > { %v1441_v1 = vadd.f32 %v1440_v8, %v1439_v17  ;;  %v994_v9 = vrot.slane %v993_v35, 1  ;;  %v1106_v2 = vrot.slane %v1105_v26, 1  ;;  %v1218_v20 = vrot.slane %v1217_v31, 1  ;;  %v2868_v36 = vld [vmem:[%s2626_s6 + $0x318] sm:$0xff] }
  0x74   : > { %v1330_v39 = vrot.slane %v1329_v63, 1  ;;  %v659_v3 = vadd.f32 %v658_v0, %v657_v24  ;;  %v771_v37 = vadd.f32 %v770_v15, %v769_v62  ;;  %v883_v48 = vadd.f32 %v882_v30, %v881_v25  ;;  %v2871_v38 = vld [vmem:[%s2626_s6 + $0x358] sm:$0xff] }
  0x75   : > { %v1442_v45 = vrot.slane %v1441_v1, 1  ;;  %v995_v33 = vadd.f32 %v994_v9, %v993_v35  ;;  %v1107_v61 = vadd.f32 %v1106_v2, %v1105_v26  ;;  %v1219_v27 = vadd.f32 %v1218_v20, %v1217_v31  ;;  %v2878_v47 = vld [vmem:[%s2626_s6 + $0x398] sm:$0xff] }
  0x76   : > { %v1331_v21 = vadd.f32 %v1330_v39, %v1329_v63  ;;  %v1684_v13 = vsel %vm1670_vm0, %v771_v37, %v659_v3  ;;  %v396_v14 = vunpack.c.l.bf16 %v2828_v42  ;;  %v412_v23 = vunpack.c.l.bf16 %v2831_v43  ;;  %v2881_v49 = vld [vmem:[%s2626_s6 + $0x3d8] sm:$0xff] }
  0x77   : > { %v1443_v54 = vadd.f32 %v1442_v45, %v1441_v1  ;;  %v1685_v28 = vsel %vm1672_vm1, %v883_v48, %v1684_v13  ;;  %v428_v40 = vunpack.c.l.bf16 %v2834_v34  ;;  %v444_v41 = vunpack.c.l.bf16 %v2837_v52 }
  0x78   : > { %v460_v44 = vunpack.c.l.bf16 %v2840_v60  ;;  %v1686_v46 = vsel %vm1674_vm2, %v995_v33, %v1685_v28  ;;  %v476_v51 = vunpack.c.l.bf16 %v2843_v50  ;;  %v492_v57 = vunpack.c.l.bf16 %v2846_v6 }
  0x79   : > { %v508_v4 = vunpack.c.l.bf16 %v2849_v7  ;;  %v1687_v5 = vsel %vm1676_vm3, %v1107_v61, %v1686_v46  ;;  %v524_v55 = vunpack.c.l.bf16 %v2853_v59  ;;  %v540_v10 = vunpack.c.l.bf16 %v2856_v53 }
  0x7a   : > { %v556_v11 = vunpack.c.l.bf16 %v2859_v22  ;;  %v1688_v56 = vsel %vm1678_vm4, %v1219_v27, %v1687_v5  ;;  %v572_v12 = vunpack.c.l.bf16 %v2865_v29  ;;  %v588_v17 = vunpack.c.l.bf16 %v2868_v36 }
  0x7b   : > { %v604_v18 = vunpack.c.l.bf16 %v2871_v38  ;;  %v1689_v58 = vsel %vm1680_vm5, %v1331_v21, %v1688_v56  ;;  %v620_v16 = vunpack.c.l.bf16 %v2878_v47  ;;  %v636_v19 = vunpack.c.l.bf16 %v2881_v49 }
  0x7c   : > { %v688_v24 = vadd.f32 %v412_v23, %v396_v14  ;;  %v1690_v62 = vsel %vm1682_vm6, %v1443_v54, %v1689_v58  ;;  %v800_v25 = vadd.f32 %v444_v41, %v428_v40  ;;  %v912_v8 = vadd.f32 %v476_v51, %v460_v44  ;;  %v2899_v58 = vld [vmem:[%s2626_s6 + $0x10] sm:$0xff] }
  0x7d   : > { %v1024_v35 = vadd.f32 %v508_v4, %v492_v57  ;;  %1941 = vmatmul.f32.vlgmr.msra.gmra.mxu1 %v1690_v62  ;;  %v1136_v31 = vadd.f32 %v540_v10, %v524_v55  ;;  %v1248_v63 = vadd.f32 %v572_v12, %v556_v11  ;;  %v1360_v32 = vadd.f32 %v604_v18, %v588_v17 }
  0x7e   : > { %v689_v26 = vrot.slane %v688_v24, 4  ;;  %v801_v0 = vrot.slane %v800_v25, 4  ;;  %v913_v15 = vrot.slane %v912_v8, 4  ;;  %v1472_v1 = vadd.f32 %v636_v19, %v620_v16 }
  0x7f   : > { %v1025_v30 = vrot.slane %v1024_v35, 4  ;;  %v1137_v2 = vrot.slane %v1136_v31, 4  ;;  %v1249_v20 = vrot.slane %v1248_v63, 4  ;;  %v1361_v39 = vrot.slane %v1360_v32, 4 }
  0x80   : > { %v690_v9 = vadd.f32 %v689_v26, %v688_v24  ;;  %v802_v3 = vadd.f32 %v801_v0, %v800_v25  ;;  %v914_v37 = vadd.f32 %v913_v15, %v912_v8  ;;  %v1473_v45 = vrot.slane %v1472_v1, 4  ;;  %v2902_v25 = vld [vmem:[%s2626_s6 + $0x50] sm:$0xff] }
  0x81   : > { %v1026_v48 = vadd.f32 %v1025_v30, %v1024_v35  ;;  %v1138_v61 = vadd.f32 %v1137_v2, %v1136_v31  ;;  %v1250_v27 = vadd.f32 %v1249_v20, %v1248_v63  ;;  %v1362_v21 = vadd.f32 %v1361_v39, %v1360_v32  ;;  %v2905_v8 = vld [vmem:[%s2626_s6 + $0x90] sm:$0xff] }
  0x82   : > { %v691_v33 = vrot.slane %v690_v9, 2  ;;  %v803_v54 = vrot.slane %v802_v3, 2  ;;  %v915_v13 = vrot.slane %v914_v37, 2  ;;  %v1474_v23 = vadd.f32 %v1473_v45, %v1472_v1  ;;  %v2908_v32 = vld [vmem:[%s2626_s6 + $0xd0] sm:$0xff] }
  0x83   : > { %v1027_v14 = vrot.slane %v1026_v48, 2  ;;  %v1139_v40 = vrot.slane %v1138_v61, 2  ;;  %v1251_v41 = vrot.slane %v1250_v27, 2  ;;  %v1363_v44 = vrot.slane %v1362_v21, 2  ;;  %v2911_v0 = vld [vmem:[%s2626_s6 + $0x110] sm:$0xff] }
  0x84   : > { %v692_v28 = vadd.f32 %v691_v33, %v690_v9  ;;  %v804_v46 = vadd.f32 %v803_v54, %v802_v3  ;;  %v916_v51 = vadd.f32 %v915_v13, %v914_v37  ;;  %v1475_v4 = vrot.slane %v1474_v23, 2  ;;  %v2914_v15 = vld [vmem:[%s2626_s6 + $0x150] sm:$0xff] }
  0x85   : > { %v1028_v57 = vadd.f32 %v1027_v14, %v1026_v48  ;;  %v1140_v55 = vadd.f32 %v1139_v40, %v1138_v61  ;;  %v1252_v10 = vadd.f32 %v1251_v41, %v1250_v27  ;;  %v1364_v11 = vadd.f32 %v1363_v44, %v1362_v21  ;;  %v2917_v2 = vld [vmem:[%s2626_s6 + $0x190] sm:$0xff] }
  0x86   : > { %v693_v5 = vrot.slane %v692_v28, 1  ;;  %v805_v56 = vrot.slane %v804_v46, 1  ;;  %v917_v12 = vrot.slane %v916_v51, 1  ;;  %v1476_v18 = vadd.f32 %v1475_v4, %v1474_v23  ;;  %v2920_v20 = vld [vmem:[%s2626_s6 + $0x1d0] sm:$0xff] }
  0x87   : > { %v1029_v17 = vrot.slane %v1028_v57, 1  ;;  %v1141_v19 = vrot.slane %v1140_v55, 1  ;;  %v1253_v24 = vrot.slane %v1252_v10, 1  ;;  %v1365_v62 = vrot.slane %v1364_v11, 1  ;;  %v2923_v39 = vld [vmem:[%s2626_s6 + $0x210] sm:$0xff] }
  0x88   : > { %v694_v16 = vadd.f32 %v693_v5, %v692_v28  ;;  %v806_v35 = vadd.f32 %v805_v56, %v804_v46  ;;  %v918_v26 = vadd.f32 %v917_v12, %v916_v51  ;;  %v1477_v63 = vrot.slane %v1476_v18, 1  ;;  %v2928_v45 = vld [vmem:[%s2626_s6 + $0x250] sm:$0xff] }
  0x89   : > { %v1030_v31 = vadd.f32 %v1029_v17, %v1028_v57  ;;  %v1142_v30 = vadd.f32 %v1141_v19, %v1140_v55  ;;  %v1254_v1 = vadd.f32 %v1253_v24, %v1252_v10  ;;  %v1366_v9 = vadd.f32 %v1365_v62, %v1364_v11  ;;  %v2931_v33 = vld [vmem:[%s2626_s6 + $0x290] sm:$0xff] }
  0x8a   : > { %v394_v3 = vunpack.c.l.bf16 %v2899_v58  ;;  %v1478_v37 = vadd.f32 %v1477_v63, %v1476_v18  ;;  %v1719_v48 = vsel %vm1670_vm0, %v806_v35, %v694_v16  ;;  %v2934_v61 = vld [vmem:[%s2626_s6 + $0x2d0] sm:$0xff]  ;;  %v410_v27 = vunpack.c.l.bf16 %v2902_v25 }
  0x8b   : > { %v426_v21 = vunpack.c.l.bf16 %v2905_v8  ;;  %v1720_v54 = vsel %vm1672_vm1, %v918_v26, %v1719_v48  ;;  %v2940_v13 = vld [vmem:[%s2626_s6 + $0x310] sm:$0xff]  ;;  %v442_v28 = vunpack.c.l.bf16 %v2908_v32  ;;  %v458_v40 = vunpack.c.l.bf16 %v2911_v0 }
  0x8c   : > { %3460 = vst [vmem:[#allocation9_spill] sm:$0xff] %v2940_v13  ;;  %v2943_v14 = vld [vmem:[%s2626_s6 + $0x350] sm:$0xff]  ;;  %v474_v41 = vunpack.c.l.bf16 %v2914_v15  ;;  %v1721_v44 = vsel %vm1674_vm2, %v1030_v31, %v1720_v54  ;;  %v490_v51 = vunpack.c.l.bf16 %v2917_v2  ;;  %v506_v57 = vunpack.c.l.bf16 %v2920_v20 }
  0x8d   : > { %3461 = vst [vmem:[#allocation10_spill] sm:$0xff] %v2943_v14  ;;  %v2946_v23 = vld [vmem:[%s2626_s6 + $0x390] sm:$0xff]  ;;  %v522_v4 = vunpack.c.l.bf16 %v2923_v39  ;;  %v1722_v5 = vsel %vm1676_vm3, %v1142_v30, %v1721_v44  ;;  %v538_v55 = vunpack.c.l.bf16 %v2928_v45  ;;  %v554_v10 = vunpack.c.l.bf16 %v2931_v33 }
  0x8e   : > { %3462 = vst [vmem:[#allocation11_spill] sm:$0xff] %v2946_v23  ;;  %v2953_v46 = vld [vmem:[%s2626_s6 + $0x3d0] sm:$0xff]  ;;  %v570_v11 = vunpack.c.l.bf16 %v2934_v61  ;;  %v1723_v56 = vsel %vm1678_vm4, %v1254_v1, %v1722_v5  ;;  %v586_v12 = vunpack.c.l.bf16 %v2940_v13  ;;  %v602_v17 = vunpack.c.l.bf16 %v2943_v14 }
  0x8f   : > { %3463 = vst [vmem:[#allocation12_spill] sm:$0xff] %v2953_v46  ;;  %v618_v18 = vunpack.c.l.bf16 %v2946_v23  ;;  %v1724_v16 = vsel %vm1680_vm5, %v1366_v9, %v1723_v56  ;;  %v634_v19 = vunpack.c.l.bf16 %v2953_v46  ;;  %v674_v24 = vadd.f32 %v410_v27, %v394_v3 }
  0x90   : > { %v786_v62 = vadd.f32 %v442_v28, %v426_v21  ;;  %v1725_v35 = vsel %vm1682_vm6, %v1478_v37, %v1724_v16  ;;  %v898_v26 = vadd.f32 %v474_v41, %v458_v40  ;;  %v1010_v31 = vadd.f32 %v506_v57, %v490_v51 }
  0x91   : > { %v1122_v63 = vadd.f32 %v538_v55, %v522_v4  ;;  %2041 = vmatmul.f32.vlgmr.msrb.gmra.mxu2 %v1725_v35  ;;  %v675_v30 = vrot.slane %v674_v24, 4  ;;  %v1234_v48 = vadd.f32 %v570_v11, %v554_v10  ;;  %v1346_v54 = vadd.f32 %v602_v17, %v586_v12  ;;  %v1881_v35 = vld.sshfl [vmem:[#allocation1] sm:$0xff pattern:$0x73625140] }
  0x92   : > { %v787_v1 = vrot.slane %v786_v62, 4  ;;  %v899_v44 = vrot.slane %v898_v26, 4  ;;  %v1011_v5 = vrot.slane %v1010_v31, 4  ;;  %v1458_v23 = vadd.f32 %v634_v19, %v618_v18  ;;  %2080 = vmatpush.xpose.msra.mxu0 %v1881_v35 }
  0x93   : > { %v1123_v14 = vrot.slane %v1122_v63, 4  ;;  %v676_v13 = vadd.f32 %v675_v30, %v674_v24  ;;  %v1235_v56 = vrot.slane %v1234_v48, 4  ;;  %v1347_v46 = vrot.slane %v1346_v54, 4  ;;  %v1884_v30 = vld.sshfl [vmem:[#allocation1 + $0x18] sm:$0xff pattern:$0x73625140] }
  0x94   : > { %v788_v9 = vadd.f32 %v787_v1, %v786_v62  ;;  %v900_v3 = vadd.f32 %v899_v44, %v898_v26  ;;  %v1012_v27 = vadd.f32 %v1011_v5, %v1010_v31  ;;  %v1459_v37 = vrot.slane %v1458_v23, 4  ;;  %2140 = vmatpush.xpose.msra.mxu3 %v1884_v30 }
  0x95   : > { %v1124_v21 = vadd.f32 %v1123_v14, %v1122_v63  ;;  %v677_v28 = vrot.slane %v676_v13, 2  ;;  %v1236_v41 = vadd.f32 %v1235_v56, %v1234_v48  ;;  %v1348_v51 = vadd.f32 %v1347_v46, %v1346_v54 }
  0x96   : > { %v789_v40 = vrot.slane %v788_v9, 2  ;;  %v901_v57 = vrot.slane %v900_v3, 2  ;;  %v1013_v4 = vrot.slane %v1012_v27, 2  ;;  %v1460_v10 = vadd.f32 %v1459_v37, %v1458_v23 }
  0x97   : > { %v1125_v55 = vrot.slane %v1124_v21, 2  ;;  %v678_v11 = vadd.f32 %v677_v28, %v676_v13  ;;  %v1237_v17 = vrot.slane %v1236_v41, 2  ;;  %v1349_v18 = vrot.slane %v1348_v51, 2 }
  0x98   : > { %v790_v12 = vadd.f32 %v789_v40, %v788_v9  ;;  %v902_v16 = vadd.f32 %v901_v57, %v900_v3  ;;  %v1014_v19 = vadd.f32 %v1013_v4, %v1012_v27  ;;  %v1461_v62 = vrot.slane %v1460_v10, 2 }
  0x99   : > { %v1126_v24 = vadd.f32 %v1125_v55, %v1124_v21  ;;  %v679_v26 = vrot.slane %v678_v11, 1  ;;  %v1238_v31 = vadd.f32 %v1237_v17, %v1236_v41  ;;  %v1350_v63 = vadd.f32 %v1349_v18, %v1348_v51 }
  0x9a   : > { %v791_v14 = vrot.slane %v790_v12, 1  ;;  %v903_v46 = vrot.slane %v902_v16, 1  ;;  %v1015_v1 = vrot.slane %v1014_v19, 1  ;;  %v1462_v54 = vadd.f32 %v1461_v62, %v1460_v10 }
  0x9b   : > { %v1127_v48 = vrot.slane %v1126_v24, 1  ;;  %v680_v13 = vadd.f32 %v679_v26, %v678_v11  ;;  %v1239_v44 = vrot.slane %v1238_v31, 1  ;;  %v1351_v5 = vrot.slane %v1350_v63, 1 }
  0x9c   : > { %v792_v23 = vadd.f32 %v791_v14, %v790_v12  ;;  %v904_v9 = vadd.f32 %v903_v46, %v902_v16  ;;  %v1016_v56 = vadd.f32 %v1015_v1, %v1014_v19  ;;  %v1463_v27 = vrot.slane %v1462_v54, 1 }
  0x9d   : > { %v1128_v3 = vadd.f32 %v1127_v48, %v1126_v24  ;;  %v1240_v21 = vadd.f32 %v1239_v44, %v1238_v31  ;;  %v1352_v37 = vadd.f32 %v1351_v5, %v1350_v63  ;;  %v397_v40 = vunpack.c.h.bf16 %v2828_v42 }
  0x9e   : > { %v1705_v28 = vsel %vm1670_vm0, %v792_v23, %v680_v13  ;;  %v1464_v41 = vadd.f32 %v1463_v27, %v1462_v54  ;;  %v413_v57 = vunpack.c.h.bf16 %v2831_v43  ;;  %v429_v4 = vunpack.c.h.bf16 %v2834_v34 }
  0x9f   : > { %v1706_v51 = vsel %vm1672_vm1, %v904_v9, %v1705_v28  ;;  %v445_v10 = vunpack.c.h.bf16 %v2837_v52  ;;  %v461_v11 = vunpack.c.h.bf16 %v2840_v60  ;;  %v477_v12 = vunpack.c.h.bf16 %v2843_v50 }
  0xa0   : > { %v1707_v55 = vsel %vm1674_vm2, %v1016_v56, %v1706_v51  ;;  %v493_v18 = vunpack.c.h.bf16 %v2846_v6  ;;  %v509_v42 = vunpack.c.h.bf16 %v2849_v7  ;;  %v525_v16 = vunpack.c.h.bf16 %v2853_v59 }
  0xa1   : > { %v1708_v17 = vsel %vm1676_vm3, %v1128_v3, %v1707_v55  ;;  %v541_v34 = vunpack.c.h.bf16 %v2856_v53  ;;  %v557_v19 = vunpack.c.h.bf16 %v2859_v22  ;;  %v573_v52 = vunpack.c.h.bf16 %v2865_v29 }
  0xa2   : > { %v1709_v43 = vsel %vm1678_vm4, %v1240_v21, %v1708_v17  ;;  %v589_v50 = vunpack.c.h.bf16 %v2868_v36  ;;  %v605_v24 = vunpack.c.h.bf16 %v2871_v38  ;;  %v621_v6 = vunpack.c.h.bf16 %v2878_v47  ;;  %v1882_v17 = vld.sshfl [vmem:[#allocation1 + $0x8] sm:$0xff pattern:$0x73625140] }
  0xa3   : > { %v1710_v60 = vsel %vm1680_vm5, %v1352_v37, %v1709_v43  ;;  %v637_v59 = vunpack.c.h.bf16 %v2881_v49  ;;  %v695_v62 = vadd.f32 %v413_v57, %v397_v40  ;;  %v807_v35 = vadd.f32 %v445_v10, %v429_v4  ;;  %2100 = vmatpush.xpose.msra.mxu1 %v1882_v17 }
  0xa4   : > { %v1711_v7 = vsel %vm1682_vm6, %v1464_v41, %v1710_v60  ;;  %v919_v53 = vadd.f32 %v477_v12, %v461_v11  ;;  %v1031_v26 = vadd.f32 %v509_v42, %v493_v18  ;;  %v1143_v22 = vadd.f32 %v541_v34, %v525_v16 }
  0xa5   : > { %2001 = vmatmul.f32.vlgmr.msrb.gmra.mxu0 %v1711_v7  ;;  %v1255_v14 = vadd.f32 %v573_v52, %v557_v19  ;;  %v696_v29 = vrot.slane %v695_v62, 4  ;;  %v808_v31 = vrot.slane %v807_v35, 4  ;;  %v1367_v63 = vadd.f32 %v605_v24, %v589_v50 }
  0xa6   : > { %v1479_v30 = vadd.f32 %v637_v59, %v621_v6  ;;  %v920_v36 = vrot.slane %v919_v53, 4  ;;  %v1032_v46 = vrot.slane %v1031_v26, 4  ;;  %v1144_v38 = vrot.slane %v1143_v22, 4 }
  0xa7   : > { %v1256_v1 = vrot.slane %v1255_v14, 4  ;;  %v697_v47 = vadd.f32 %v696_v29, %v695_v62  ;;  %v809_v48 = vadd.f32 %v808_v31, %v807_v35  ;;  %v1368_v54 = vrot.slane %v1367_v63, 4 }
  0xa8   : > { %v1480_v13 = vrot.slane %v1479_v30, 4  ;;  %v921_v49 = vadd.f32 %v920_v36, %v919_v53  ;;  %v1033_v23 = vadd.f32 %v1032_v46, %v1031_v26  ;;  %v1145_v44 = vadd.f32 %v1144_v38, %v1143_v22 }
  0xa9   : > { %v1257_v5 = vadd.f32 %v1256_v1, %v1255_v14  ;;  %v698_v9 = vrot.slane %v697_v47, 2  ;;  %v810_v56 = vrot.slane %v809_v48, 2  ;;  %v1369_v3 = vadd.f32 %v1368_v54, %v1367_v63 }
  0xaa   : > { %v1481_v27 = vadd.f32 %v1480_v13, %v1479_v30  ;;  %v922_v21 = vrot.slane %v921_v49, 2  ;;  %v1034_v37 = vrot.slane %v1033_v23, 2  ;;  %v1146_v28 = vrot.slane %v1145_v44, 2 }
  0xab   : > { %v1258_v40 = vrot.slane %v1257_v5, 2  ;;  %v699_v41 = vadd.f32 %v698_v9, %v697_v47  ;;  %v811_v51 = vadd.f32 %v810_v56, %v809_v48  ;;  %v1370_v57 = vrot.slane %v1369_v3, 2  ;;  %v3467_v9 = vld [vmem:[#allocation12_spill] sm:$0xff] }
  0xac   : > { %v1482_v4 = vrot.slane %v1481_v27, 2  ;;  %v923_v55 = vadd.f32 %v922_v21, %v921_v49  ;;  %v1035_v10 = vadd.f32 %v1034_v37, %v1033_v23  ;;  %v1147_v11 = vadd.f32 %v1146_v28, %v1145_v44  ;;  %v3464_v49 = vld [vmem:[#allocation9_spill] sm:$0xff]  ;;  %v3465_v23 = vld [vmem:[#allocation10_spill] sm:$0xff]  ;;  %v3466_v44 = vld [vmem:[#allocation11_spill] sm:$0xff] }
  0xad   : > { %v1259_v12 = vadd.f32 %v1258_v40, %v1257_v5  ;;  %v700_v18 = vrot.slane %v699_v41, 1  ;;  %v812_v42 = vrot.slane %v811_v51, 1  ;;  %v1371_v16 = vadd.f32 %v1370_v57, %v1369_v3 }
  0xae   : > { %v1483_v43 = vadd.f32 %v1482_v4, %v1481_v27  ;;  %v924_v34 = vrot.slane %v923_v55, 1  ;;  %v1036_v19 = vrot.slane %v1035_v10, 1  ;;  %v1148_v52 = vrot.slane %v1147_v11, 1 }
  0xaf   : > { %v1260_v60 = vrot.slane %v1259_v12, 1  ;;  %v701_v50 = vadd.f32 %v700_v18, %v699_v41  ;;  %v813_v24 = vadd.f32 %v812_v42, %v811_v51  ;;  %v1372_v6 = vrot.slane %v1371_v16, 1 }
  0xb0   : > { %v1484_v7 = vrot.slane %v1483_v43, 1  ;;  %v925_v59 = vadd.f32 %v924_v34, %v923_v55  ;;  %v1037_v62 = vadd.f32 %v1036_v19, %v1035_v10  ;;  %v1149_v35 = vadd.f32 %v1148_v52, %v1147_v11 }
  0xb1   : > { %v1261_v53 = vadd.f32 %v1260_v60, %v1259_v12  ;;  %v1373_v26 = vadd.f32 %v1372_v6, %v1371_v16  ;;  %v1726_v14 = vsel %vm1670_vm0, %v813_v24, %v701_v50  ;;  %v395_v29 = vunpack.c.h.bf16 %v2899_v58 }
  0xb2   : > { %v1485_v22 = vadd.f32 %v1484_v7, %v1483_v43  ;;  %v1727_v31 = vsel %vm1672_vm1, %v925_v59, %v1726_v14  ;;  %v411_v63 = vunpack.c.h.bf16 %v2902_v25  ;;  %v427_v30 = vunpack.c.h.bf16 %v2905_v8 }
  0xb3   : > { %v443_v36 = vunpack.c.h.bf16 %v2908_v32  ;;  %v1728_v46 = vsel %vm1674_vm2, %v1037_v62, %v1727_v31  ;;  %v459_v38 = vunpack.c.h.bf16 %v2911_v0  ;;  %v475_v1 = vunpack.c.h.bf16 %v2914_v15  ;;  %v1887_v31 = vld.sshfl [vmem:[#allocation1 + $0x30] sm:$0xff pattern:$0x73625140] }
  0xb4   : > { %v491_v47 = vunpack.c.h.bf16 %v2917_v2  ;;  %v1729_v48 = vsel %vm1676_vm3, %v1149_v35, %v1728_v46  ;;  %v507_v58 = vunpack.c.h.bf16 %v2920_v20  ;;  %v523_v54 = vunpack.c.h.bf16 %v2923_v39  ;;  %2200 = vmatpush.xpose.msrb.mxu2 %v1887_v31 }
  0xb5   : > { %v539_v25 = vunpack.c.h.bf16 %v2928_v45  ;;  %v1730_v8 = vsel %vm1678_vm4, %v1261_v53, %v1729_v48  ;;  %v555_v32 = vunpack.c.h.bf16 %v2931_v33  ;;  %v571_v13 = vunpack.c.h.bf16 %v2934_v61 }
  0xb6   : > { %v587_v0 = vunpack.c.h.bf16 %v3464_v49  ;;  %v1731_v15 = vsel %vm1680_vm5, %v1373_v26, %v1730_v8  ;;  %v603_v2 = vunpack.c.h.bf16 %v3465_v23  ;;  %v619_v5 = vunpack.c.h.bf16 %v3466_v44  ;;  %v3022_v49 = vld [vmem:[%s2626_s6 + $0xa8] sm:$0xff] }
  0xb7   : > { %v635_v20 = vunpack.c.h.bf16 %v3467_v9  ;;  %v1732_v39 = vsel %vm1682_vm6, %v1485_v22, %v1731_v15  ;;  %v681_v56 = vadd.f32 %v411_v63, %v395_v29  ;;  %v793_v45 = vadd.f32 %v443_v36, %v427_v30  ;;  %v3028_v15 = vld [vmem:[%s2626_s6 + $0x128] sm:$0xff] }
  0xb8   : > { %v905_v3 = vadd.f32 %v475_v1, %v459_v38  ;;  %2061 = vmatmul.f32.vlgmr.msrb.gmra.mxu3 %v1732_v39  ;;  %v1017_v27 = vadd.f32 %v507_v58, %v491_v47  ;;  %v1129_v33 = vadd.f32 %v539_v25, %v523_v54  ;;  %v1241_v21 = vadd.f32 %v571_v13, %v555_v32  ;;  %v3016_v58 = vld [vmem:[%s2626_s6 + $0x28] sm:$0xff] }
  0xb9   : > { %v1353_v61 = vadd.f32 %v603_v2, %v587_v0  ;;  %v682_v37 = vrot.slane %v681_v56, 4  ;;  %v794_v28 = vrot.slane %v793_v45, 4  ;;  %v1465_v41 = vadd.f32 %v635_v20, %v619_v5  ;;  %v3019_v54 = vld [vmem:[%s2626_s6 + $0x68] sm:$0xff] }
  0xba   : > { %v906_v40 = vrot.slane %v905_v3, 4  ;;  %v1018_v51 = vrot.slane %v1017_v27, 4  ;;  %v1130_v57 = vrot.slane %v1129_v33, 4  ;;  %v1242_v4 = vrot.slane %v1241_v21, 4  ;;  %v3025_v0 = vld [vmem:[%s2626_s6 + $0xe8] sm:$0xff] }
  0xbb   : > { %v1354_v55 = vrot.slane %v1353_v61, 4  ;;  %v683_v10 = vadd.f32 %v682_v37, %v681_v56  ;;  %v795_v11 = vadd.f32 %v794_v28, %v793_v45  ;;  %v1466_v17 = vrot.slane %v1465_v41, 4  ;;  %v3031_v9 = vld [vmem:[%s2626_s6 + $0x168] sm:$0xff] }
  0xbc   : > { %v907_v12 = vadd.f32 %v906_v40, %v905_v3  ;;  %v1019_v18 = vadd.f32 %v1018_v51, %v1017_v27  ;;  %v1131_v42 = vadd.f32 %v1130_v57, %v1129_v33  ;;  %v1243_v16 = vadd.f32 %v1242_v4, %v1241_v21  ;;  %v3034_v20 = vld [vmem:[%s2626_s6 + $0x1a8] sm:$0xff] }
  0xbd   : > { %v1355_v43 = vadd.f32 %v1354_v55, %v1353_v61  ;;  %v684_v34 = vrot.slane %v683_v10, 2  ;;  %v796_v19 = vrot.slane %v795_v11, 2  ;;  %v1467_v60 = vadd.f32 %v1466_v17, %v1465_v41  ;;  %v3037_v39 = vld [vmem:[%s2626_s6 + $0x1e8] sm:$0xff] }
  0xbe   : > { %v908_v52 = vrot.slane %v907_v12, 2  ;;  %v1020_v50 = vrot.slane %v1019_v18, 2  ;;  %v1132_v24 = vrot.slane %v1131_v42, 2  ;;  %v1244_v6 = vrot.slane %v1243_v16, 2  ;;  %v3041_v3 = vld [vmem:[%s2626_s6 + $0x228] sm:$0xff] }
  0xbf   : > { %v1356_v7 = vrot.slane %v1355_v43, 2  ;;  %v685_v59 = vadd.f32 %v684_v34, %v683_v10  ;;  %v797_v62 = vadd.f32 %v796_v19, %v795_v11  ;;  %v1468_v53 = vrot.slane %v1467_v60, 2  ;;  %v3044_v27 = vld [vmem:[%s2626_s6 + $0x268] sm:$0xff] }
  0xc0   : > { %v909_v35 = vadd.f32 %v908_v52, %v907_v12  ;;  %v1021_v26 = vadd.f32 %v1020_v50, %v1019_v18  ;;  %v1133_v22 = vadd.f32 %v1132_v24, %v1131_v42  ;;  %v1245_v14 = vadd.f32 %v1244_v6, %v1243_v16  ;;  %v3047_v33 = vld [vmem:[%s2626_s6 + $0x2a8] sm:$0xff] }
  0xc1   : > { %v1357_v29 = vadd.f32 %v1356_v7, %v1355_v43  ;;  %v686_v63 = vrot.slane %v685_v59, 1  ;;  %v798_v30 = vrot.slane %v797_v62, 1  ;;  %v1469_v46 = vadd.f32 %v1468_v53, %v1467_v60  ;;  %v3053_v28 = vld [vmem:[%s2626_s6 + $0x2e8] sm:$0xff] }
  0xc2   : > { %v910_v36 = vrot.slane %v909_v35, 1  ;;  %v1022_v38 = vrot.slane %v1021_v26, 1  ;;  %v1134_v1 = vrot.slane %v1133_v22, 1  ;;  %v1246_v47 = vrot.slane %v1245_v14, 1  ;;  %v3056_v40 = vld [vmem:[%s2626_s6 + $0x328] sm:$0xff] }
  0xc3   : > { %v1358_v48 = vrot.slane %v1357_v29, 1  ;;  %v687_v25 = vadd.f32 %v686_v63, %v685_v59  ;;  %v799_v8 = vadd.f32 %v798_v30, %v797_v62  ;;  %v1470_v13 = vrot.slane %v1469_v46, 1  ;;  %v3059_v41 = vld [vmem:[%s2626_s6 + $0x368] sm:$0xff] }
  0xc4   : > { %v911_v32 = vadd.f32 %v910_v36, %v909_v35  ;;  %v1023_v23 = vadd.f32 %v1022_v38, %v1021_v26  ;;  %v1135_v2 = vadd.f32 %v1134_v1, %v1133_v22  ;;  %v1247_v44 = vadd.f32 %v1246_v47, %v1245_v14  ;;  %v3066_v10 = vld [vmem:[%s2626_s6 + $0x3a8] sm:$0xff] }
  0xc5   : > { %v1359_v5 = vadd.f32 %v1358_v48, %v1357_v29  ;;  %v1471_v56 = vadd.f32 %v1470_v13, %v1469_v46  ;;  %v1712_v45 = vsel %vm1670_vm0, %v799_v8, %v687_v25  ;;  %v400_v21 = vunpack.c.l.bf16 %v3016_v58  ;;  %v3069_v11 = vld [vmem:[%s2626_s6 + $0x3e8] sm:$0xff] }
  0xc6   : > { %v416_v61 = vunpack.c.l.bf16 %v3019_v54  ;;  %v1713_v37 = vsel %vm1672_vm1, %v911_v32, %v1712_v45  ;;  %v432_v51 = vunpack.c.l.bf16 %v3022_v49  ;;  %v448_v57 = vunpack.c.l.bf16 %v3025_v0 }
  0xc7   : > { %v464_v4 = vunpack.c.l.bf16 %v3028_v15  ;;  %v1714_v55 = vsel %vm1674_vm2, %v1023_v23, %v1713_v37  ;;  %v480_v12 = vunpack.c.l.bf16 %v3031_v9  ;;  %v496_v17 = vunpack.c.l.bf16 %v3034_v20 }
  0xc8   : > { %v512_v18 = vunpack.c.l.bf16 %v3037_v39  ;;  %v1715_v42 = vsel %vm1676_vm3, %v1135_v2, %v1714_v55  ;;  %v528_v16 = vunpack.c.l.bf16 %v3041_v3  ;;  %v544_v43 = vunpack.c.l.bf16 %v3044_v27 }
  0xc9   : > { %v560_v34 = vunpack.c.l.bf16 %v3047_v33  ;;  %v1716_v19 = vsel %vm1678_vm4, %v1247_v44, %v1715_v42  ;;  %v576_v52 = vunpack.c.l.bf16 %v3053_v28  ;;  %v592_v60 = vunpack.c.l.bf16 %v3056_v40 }
  0xca   : > { %v608_v50 = vunpack.c.l.bf16 %v3059_v41  ;;  %v1717_v24 = vsel %vm1680_vm5, %v1359_v5, %v1716_v19  ;;  %v624_v6 = vunpack.c.l.bf16 %v3066_v10  ;;  %v640_v7 = vunpack.c.l.bf16 %v3069_v11 }
  0xcb   : > { %v716_v59 = vadd.f32 %v416_v61, %v400_v21  ;;  %v1718_v62 = vsel %vm1682_vm6, %v1471_v56, %v1717_v24  ;;  %v828_v35 = vadd.f32 %v448_v57, %v432_v51  ;;  %v940_v53 = vadd.f32 %v480_v12, %v464_v4  ;;  %v3087_v24 = vld [vmem:[%s2626_s6 + $0x20] sm:$0xff] }
  0xcc   : > { %v1052_v26 = vadd.f32 %v512_v18, %v496_v17  ;;  %2021 = vmatmul.f32.vlgmr.msrb.gmra.mxu1 %v1718_v62  ;;  %v1164_v14 = vadd.f32 %v544_v43, %v528_v16  ;;  %v1276_v29 = vadd.f32 %v576_v52, %v560_v34  ;;  %v1388_v31 = vadd.f32 %v608_v50, %v592_v60 }
  0xcd   : > { %v717_v22 = vrot.slane %v716_v59, 4  ;;  %v829_v63 = vrot.slane %v828_v35, 4  ;;  %v941_v30 = vrot.slane %v940_v53, 4  ;;  %v1500_v46 = vadd.f32 %v640_v7, %v624_v6 }
  0xce   : > { %v1053_v36 = vrot.slane %v1052_v26, 4  ;;  %v1165_v1 = vrot.slane %v1164_v14, 4  ;;  %v1277_v47 = vrot.slane %v1276_v29, 4  ;;  %v1389_v48 = vrot.slane %v1388_v31, 4 }
  0xcf   : > { %v718_v38 = vadd.f32 %v717_v22, %v716_v59  ;;  %v830_v25 = vadd.f32 %v829_v63, %v828_v35  ;;  %v942_v8 = vadd.f32 %v941_v30, %v940_v53  ;;  %v1501_v13 = vrot.slane %v1500_v46, 4  ;;  %v3090_v35 = vld [vmem:[%s2626_s6 + $0x60] sm:$0xff] }
  0xd0   : > { %v1054_v32 = vadd.f32 %v1053_v36, %v1052_v26  ;;  %v1166_v2 = vadd.f32 %v1165_v1, %v1164_v14  ;;  %v1278_v44 = vadd.f32 %v1277_v47, %v1276_v29  ;;  %v1390_v5 = vadd.f32 %v1389_v48, %v1388_v31  ;;  %v3093_v53 = vld [vmem:[%s2626_s6 + $0xa0] sm:$0xff] }
  0xd1   : > { %v719_v23 = vrot.slane %v718_v38, 2  ;;  %v831_v56 = vrot.slane %v830_v25, 2  ;;  %v943_v45 = vrot.slane %v942_v8, 2  ;;  %v1502_v61 = vadd.f32 %v1501_v13, %v1500_v46  ;;  %v3096_v31 = vld [vmem:[%s2626_s6 + $0xe0] sm:$0xff] }
  0xd2   : > { %v1055_v21 = vrot.slane %v1054_v32, 2  ;;  %v1167_v51 = vrot.slane %v1166_v2, 2  ;;  %v1279_v57 = vrot.slane %v1278_v44, 2  ;;  %v1391_v4 = vrot.slane %v1390_v5, 2  ;;  %v3099_v63 = vld [vmem:[%s2626_s6 + $0x120] sm:$0xff] }
  0xd3   : > { %v720_v37 = vadd.f32 %v719_v23, %v718_v38  ;;  %v832_v55 = vadd.f32 %v831_v56, %v830_v25  ;;  %v944_v12 = vadd.f32 %v943_v45, %v942_v8  ;;  %v1503_v18 = vrot.slane %v1502_v61, 2  ;;  %v3102_v30 = vld [vmem:[%s2626_s6 + $0x160] sm:$0xff] }
  0xd4   : > { %v1056_v17 = vadd.f32 %v1055_v21, %v1054_v32  ;;  %v1168_v16 = vadd.f32 %v1167_v51, %v1166_v2  ;;  %v1280_v43 = vadd.f32 %v1279_v57, %v1278_v44  ;;  %v1392_v34 = vadd.f32 %v1391_v4, %v1390_v5  ;;  %v3105_v1 = vld [vmem:[%s2626_s6 + $0x1a0] sm:$0xff] }
  0xd5   : > { %v721_v42 = vrot.slane %v720_v37, 1  ;;  %v833_v19 = vrot.slane %v832_v55, 1  ;;  %v945_v52 = vrot.slane %v944_v12, 1  ;;  %v1504_v50 = vadd.f32 %v1503_v18, %v1502_v61  ;;  %v3108_v47 = vld [vmem:[%s2626_s6 + $0x1e0] sm:$0xff] }
  0xd6   : > { %v1057_v60 = vrot.slane %v1056_v17, 1  ;;  %v1169_v7 = vrot.slane %v1168_v16, 1  ;;  %v1281_v59 = vrot.slane %v1280_v43, 1  ;;  %v1393_v62 = vrot.slane %v1392_v34, 1  ;;  %v3111_v48 = vld [vmem:[%s2626_s6 + $0x220] sm:$0xff] }
  0xd7   : > { %v722_v6 = vadd.f32 %v721_v42, %v720_v37  ;;  %v834_v26 = vadd.f32 %v833_v19, %v832_v55  ;;  %v946_v22 = vadd.f32 %v945_v52, %v944_v12  ;;  %v1505_v29 = vrot.slane %v1504_v50, 1  ;;  %v3116_v13 = vld [vmem:[%s2626_s6 + $0x260] sm:$0xff] }
  0xd8   : > { %v1058_v14 = vadd.f32 %v1057_v60, %v1056_v17  ;;  %v1170_v36 = vadd.f32 %v1169_v7, %v1168_v16  ;;  %v1282_v46 = vadd.f32 %v1281_v59, %v1280_v43  ;;  %v1394_v38 = vadd.f32 %v1393_v62, %v1392_v34  ;;  %v3119_v23 = vld [vmem:[%s2626_s6 + $0x2a0] sm:$0xff] }
  0xd9   : > { %v398_v25 = vunpack.c.l.bf16 %v3087_v24  ;;  %v1506_v8 = vadd.f32 %v1505_v29, %v1504_v50  ;;  %v1747_v32 = vsel %vm1670_vm0, %v834_v26, %v722_v6  ;;  %v3122_v2 = vld [vmem:[%s2626_s6 + $0x2e0] sm:$0xff]  ;;  %v414_v44 = vunpack.c.l.bf16 %v3090_v35 }
  0xda   : > { %v430_v5 = vunpack.c.l.bf16 %v3093_v53  ;;  %v1748_v56 = vsel %vm1672_vm1, %v946_v22, %v1747_v32  ;;  %v3128_v45 = vld [vmem:[%s2626_s6 + $0x320] sm:$0xff]  ;;  %v446_v37 = vunpack.c.l.bf16 %v3096_v31  ;;  %v462_v51 = vunpack.c.l.bf16 %v3099_v63 }
  0xdb   : > { %3468 = vst [vmem:[#allocation9_spill] sm:$0xff] %v3128_v45  ;;  %v3131_v21 = vld [vmem:[%s2626_s6 + $0x360] sm:$0xff]  ;;  %v478_v57 = vunpack.c.l.bf16 %v3102_v30  ;;  %v1749_v4 = vsel %vm1674_vm2, %v1058_v14, %v1748_v56  ;;  %v494_v12 = vunpack.c.l.bf16 %v3105_v1  ;;  %v510_v17 = vunpack.c.l.bf16 %v3108_v47 }
  0xdc   : > { %3469 = vst [vmem:[#allocation10_spill] sm:$0xff] %v3131_v21  ;;  %v3134_v61 = vld [vmem:[%s2626_s6 + $0x3a0] sm:$0xff]  ;;  %v526_v18 = vunpack.c.l.bf16 %v3111_v48  ;;  %v1750_v42 = vsel %vm1676_vm3, %v1170_v36, %v1749_v4  ;;  %v542_v16 = vunpack.c.l.bf16 %v3116_v13  ;;  %v558_v43 = vunpack.c.l.bf16 %v3119_v23 }
  0xdd   : > { %3470 = vst [vmem:[#allocation11_spill] sm:$0xff] %v3134_v61  ;;  %v3141_v55 = vld [vmem:[%s2626_s6 + $0x3e0] sm:$0xff]  ;;  %v574_v34 = vunpack.c.l.bf16 %v3122_v2  ;;  %v1751_v19 = vsel %vm1678_vm4, %v1282_v46, %v1750_v42  ;;  %v590_v52 = vunpack.c.l.bf16 %v3128_v45  ;;  %v606_v60 = vunpack.c.l.bf16 %v3131_v21 }
  0xde   : > { %3471 = vst [vmem:[#allocation12_spill] sm:$0xff] %v3141_v55  ;;  %v622_v50 = vunpack.c.l.bf16 %v3134_v61  ;;  %v1752_v6 = vsel %vm1680_vm5, %v1394_v38, %v1751_v19  ;;  %v638_v7 = vunpack.c.l.bf16 %v3141_v55  ;;  %v702_v59 = vadd.f32 %v414_v44, %v398_v25 }
  0xdf   : > { %v814_v62 = vadd.f32 %v446_v37, %v430_v5  ;;  %v1753_v26 = vsel %vm1682_vm6, %v1506_v8, %v1752_v6  ;;  %v926_v22 = vadd.f32 %v478_v57, %v462_v51  ;;  %v1038_v14 = vadd.f32 %v510_v17, %v494_v12 }
  0xe0   : > { %v1150_v29 = vadd.f32 %v542_v16, %v526_v18  ;;  %2121 = vmatmul.f32.vlgmr.msra.gmra.mxu2 %v1753_v26  ;;  %v703_v36 = vrot.slane %v702_v59, 4  ;;  %v1262_v32 = vadd.f32 %v574_v34, %v558_v43  ;;  %v1374_v56 = vadd.f32 %v606_v60, %v590_v52  ;;  %v1885_v26 = vld.sshfl [vmem:[#allocation1 + $0x20] sm:$0xff pattern:$0x73625140] }
  0xe1   : > { %v815_v46 = vrot.slane %v814_v62, 4  ;;  %v927_v4 = vrot.slane %v926_v22, 4  ;;  %v1039_v42 = vrot.slane %v1038_v14, 4  ;;  %v1486_v61 = vadd.f32 %v638_v7, %v622_v50  ;;  %2160 = vmatpush.xpose.msrb.mxu0 %v1885_v26 }
  0xe2   : > { %v1151_v21 = vrot.slane %v1150_v29, 4  ;;  %v704_v45 = vadd.f32 %v703_v36, %v702_v59  ;;  %v1263_v19 = vrot.slane %v1262_v32, 4  ;;  %v1375_v55 = vrot.slane %v1374_v56, 4  ;;  %v1888_v36 = vld.sshfl [vmem:[#allocation1 + $0x38] sm:$0xff pattern:$0x73625140] }
  0xe3   : > { %v816_v38 = vadd.f32 %v815_v46, %v814_v62  ;;  %v928_v25 = vadd.f32 %v927_v4, %v926_v22  ;;  %v1040_v44 = vadd.f32 %v1039_v42, %v1038_v14  ;;  %v1487_v8 = vrot.slane %v1486_v61, 4  ;;  %2220 = vmatpush.xpose.msrb.mxu3 %v1888_v36 }
  0xe4   : > { %v1152_v5 = vadd.f32 %v1151_v21, %v1150_v29  ;;  %v705_v37 = vrot.slane %v704_v45, 2  ;;  %v1264_v57 = vadd.f32 %v1263_v19, %v1262_v32  ;;  %v1376_v12 = vadd.f32 %v1375_v55, %v1374_v56 }
  0xe5   : > { %v817_v51 = vrot.slane %v816_v38, 2  ;;  %v929_v17 = vrot.slane %v928_v25, 2  ;;  %v1041_v18 = vrot.slane %v1040_v44, 2  ;;  %v1488_v43 = vadd.f32 %v1487_v8, %v1486_v61 }
  0xe6   : > { %v1153_v16 = vrot.slane %v1152_v5, 2  ;;  %v706_v34 = vadd.f32 %v705_v37, %v704_v45  ;;  %v1265_v60 = vrot.slane %v1264_v57, 2  ;;  %v1377_v50 = vrot.slane %v1376_v12, 2 }
  0xe7   : > { %v818_v52 = vadd.f32 %v817_v51, %v816_v38  ;;  %v930_v6 = vadd.f32 %v929_v17, %v928_v25  ;;  %v1042_v7 = vadd.f32 %v1041_v18, %v1040_v44  ;;  %v1489_v62 = vrot.slane %v1488_v43, 2 }
  0xe8   : > { %v1154_v59 = vadd.f32 %v1153_v16, %v1152_v5  ;;  %v707_v22 = vrot.slane %v706_v34, 1  ;;  %v1266_v14 = vadd.f32 %v1265_v60, %v1264_v57  ;;  %v1378_v29 = vadd.f32 %v1377_v50, %v1376_v12 }
  0xe9   : > { %v819_v21 = vrot.slane %v818_v52, 1  ;;  %v931_v55 = vrot.slane %v930_v6, 1  ;;  %v1043_v46 = vrot.slane %v1042_v7, 1  ;;  %v1490_v56 = vadd.f32 %v1489_v62, %v1488_v43 }
  0xea   : > { %v1155_v32 = vrot.slane %v1154_v59, 1  ;;  %v708_v45 = vadd.f32 %v707_v22, %v706_v34  ;;  %v1267_v4 = vrot.slane %v1266_v14, 1  ;;  %v1379_v42 = vrot.slane %v1378_v29, 1 }
  0xeb   : > { %v820_v61 = vadd.f32 %v819_v21, %v818_v52  ;;  %v932_v38 = vadd.f32 %v931_v55, %v930_v6  ;;  %v1044_v19 = vadd.f32 %v1043_v46, %v1042_v7  ;;  %v1491_v44 = vrot.slane %v1490_v56, 1 }
  0xec   : > { %v1156_v25 = vadd.f32 %v1155_v32, %v1154_v59  ;;  %v1268_v5 = vadd.f32 %v1267_v4, %v1266_v14  ;;  %v1380_v8 = vadd.f32 %v1379_v42, %v1378_v29  ;;  %v401_v51 = vunpack.c.h.bf16 %v3016_v58 }
  0xed   : > { %v1733_v37 = vsel %vm1670_vm0, %v820_v61, %v708_v45  ;;  %v1492_v57 = vadd.f32 %v1491_v44, %v1490_v56  ;;  %v417_v17 = vunpack.c.h.bf16 %v3019_v54  ;;  %v433_v18 = vunpack.c.h.bf16 %v3022_v49 }
  0xee   : > { %v1734_v12 = vsel %vm1672_vm1, %v932_v38, %v1733_v37  ;;  %v449_v43 = vunpack.c.h.bf16 %v3025_v0  ;;  %v465_v34 = vunpack.c.h.bf16 %v3028_v15  ;;  %v481_v52 = vunpack.c.h.bf16 %v3031_v9 }
  0xef   : > { %v1735_v16 = vsel %vm1674_vm2, %v1044_v19, %v1734_v12  ;;  %v497_v50 = vunpack.c.h.bf16 %v3034_v20  ;;  %v513_v58 = vunpack.c.h.bf16 %v3037_v39  ;;  %v529_v6 = vunpack.c.h.bf16 %v3041_v3 }
  0xf0   : > { %v1736_v60 = vsel %vm1676_vm3, %v1156_v25, %v1735_v16  ;;  %v545_v49 = vunpack.c.h.bf16 %v3044_v27  ;;  %v561_v7 = vunpack.c.h.bf16 %v3047_v33  ;;  %v577_v0 = vunpack.c.h.bf16 %v3053_v28 }
  0xf1   : > { %v1737_v54 = vsel %vm1678_vm4, %v1268_v5, %v1736_v60  ;;  %v593_v9 = vunpack.c.h.bf16 %v3056_v40  ;;  %v609_v59 = vunpack.c.h.bf16 %v3059_v41  ;;  %v625_v20 = vunpack.c.h.bf16 %v3066_v10  ;;  %v1886_v60 = vld.sshfl [vmem:[#allocation1 + $0x28] sm:$0xff pattern:$0x73625140] }
  0xf2   : > { %v1738_v15 = vsel %vm1680_vm5, %v1380_v8, %v1737_v54  ;;  %v641_v3 = vunpack.c.h.bf16 %v3069_v11  ;;  %v723_v62 = vadd.f32 %v417_v17, %v401_v51  ;;  %v835_v26 = vadd.f32 %v449_v43, %v433_v18  ;;  %2180 = vmatpush.xpose.msrb.mxu1 %v1886_v60 }
  0xf3   : > { %v1739_v39 = vsel %vm1682_vm6, %v1492_v57, %v1738_v15  ;;  %v947_v27 = vadd.f32 %v481_v52, %v465_v34  ;;  %v1059_v22 = vadd.f32 %v513_v58, %v497_v50  ;;  %v1171_v33 = vadd.f32 %v545_v49, %v529_v6 }
  0xf4   : > { %2081 = vmatmul.f32.vlgmr.msra.gmra.mxu0 %v1739_v39  ;;  %v1283_v21 = vadd.f32 %v577_v0, %v561_v7  ;;  %v724_v28 = vrot.slane %v723_v62, 4  ;;  %v836_v14 = vrot.slane %v835_v26, 4  ;;  %v1395_v29 = vadd.f32 %v609_v59, %v593_v9 }
  0xf5   : > { %v1507_v36 = vadd.f32 %v641_v3, %v625_v20  ;;  %v948_v40 = vrot.slane %v947_v27, 4  ;;  %v1060_v55 = vrot.slane %v1059_v22, 4  ;;  %v1172_v41 = vrot.slane %v1171_v33, 4 }
  0xf6   : > { %v1284_v46 = vrot.slane %v1283_v21, 4  ;;  %v725_v10 = vadd.f32 %v724_v28, %v723_v62  ;;  %v837_v32 = vadd.f32 %v836_v14, %v835_v26  ;;  %v1396_v56 = vrot.slane %v1395_v29, 4 }
  0xf7   : > { %v1508_v45 = vrot.slane %v1507_v36, 4  ;;  %v949_v11 = vadd.f32 %v948_v40, %v947_v27  ;;  %v1061_v61 = vadd.f32 %v1060_v55, %v1059_v22  ;;  %v1173_v4 = vadd.f32 %v1172_v41, %v1171_v33 }
  0xf8   : > { %v1285_v42 = vadd.f32 %v1284_v46, %v1283_v21  ;;  %v726_v38 = vrot.slane %v725_v10, 2  ;;  %v838_v19 = vrot.slane %v837_v32, 2  ;;  %v1397_v25 = vadd.f32 %v1396_v56, %v1395_v29 }
  0xf9   : > { %v1509_v44 = vadd.f32 %v1508_v45, %v1507_v36  ;;  %v950_v5 = vrot.slane %v949_v11, 2  ;;  %v1062_v8 = vrot.slane %v1061_v61, 2  ;;  %v1174_v37 = vrot.slane %v1173_v4, 2 }
  0xfa   : > { %v1286_v51 = vrot.slane %v1285_v42, 2  ;;  %v727_v57 = vadd.f32 %v726_v38, %v725_v10  ;;  %v839_v12 = vadd.f32 %v838_v19, %v837_v32  ;;  %v1398_v17 = vrot.slane %v1397_v25, 2  ;;  %v3475_v38 = vld [vmem:[#allocation12_spill] sm:$0xff] }
  0xfb   : > { %v1510_v18 = vrot.slane %v1509_v44, 2  ;;  %v951_v16 = vadd.f32 %v950_v5, %v949_v11  ;;  %v1063_v43 = vadd.f32 %v1062_v8, %v1061_v61  ;;  %v1175_v34 = vadd.f32 %v1174_v37, %v1173_v4  ;;  %v3472_v11 = vld [vmem:[#allocation9_spill] sm:$0xff]  ;;  %v3473_v61 = vld [vmem:[#allocation10_spill] sm:$0xff]  ;;  %v3474_v4 = vld [vmem:[#allocation11_spill] sm:$0xff] }
  0xfc   : > { %v1287_v52 = vadd.f32 %v1286_v51, %v1285_v42  ;;  %v728_v50 = vrot.slane %v727_v57, 1  ;;  %v840_v58 = vrot.slane %v839_v12, 1  ;;  %v1399_v6 = vadd.f32 %v1398_v17, %v1397_v25 }
  0xfd   : > { %v1511_v54 = vadd.f32 %v1510_v18, %v1509_v44  ;;  %v952_v49 = vrot.slane %v951_v16, 1  ;;  %v1064_v7 = vrot.slane %v1063_v43, 1  ;;  %v1176_v0 = vrot.slane %v1175_v34, 1 }
  0xfe   : > { %v1288_v15 = vrot.slane %v1287_v52, 1  ;;  %v729_v9 = vadd.f32 %v728_v50, %v727_v57  ;;  %v841_v59 = vadd.f32 %v840_v58, %v839_v12  ;;  %v1400_v20 = vrot.slane %v1399_v6, 1 }
  0xff   : > { %v1512_v39 = vrot.slane %v1511_v54, 1  ;;  %v953_v3 = vadd.f32 %v952_v49, %v951_v16  ;;  %v1065_v62 = vadd.f32 %v1064_v7, %v1063_v43  ;;  %v1177_v26 = vadd.f32 %v1176_v0, %v1175_v34 }
 0x100   : > { %v1289_v27 = vadd.f32 %v1288_v15, %v1287_v52  ;;  %v1401_v22 = vadd.f32 %v1400_v20, %v1399_v6  ;;  %v1754_v21 = vsel %vm1670_vm0, %v841_v59, %v729_v9  ;;  %v399_v28 = vunpack.c.h.bf16 %v3087_v24 }
 0x101   : > { %v1513_v33 = vadd.f32 %v1512_v39, %v1511_v54  ;;  %v1755_v14 = vsel %vm1672_vm1, %v953_v3, %v1754_v21  ;;  %v415_v29 = vunpack.c.h.bf16 %v3090_v35  ;;  %v431_v36 = vunpack.c.h.bf16 %v3093_v53 }
 0x102   : > { %v447_v40 = vunpack.c.h.bf16 %v3096_v31  ;;  %v1756_v55 = vsel %vm1674_vm2, %v1065_v62, %v1755_v14  ;;  %v463_v41 = vunpack.c.h.bf16 %v3099_v63  ;;  %v479_v46 = vunpack.c.h.bf16 %v3102_v30 }
 0x103   : > { %v495_v10 = vunpack.c.h.bf16 %v3105_v1  ;;  %v1757_v32 = vsel %vm1676_vm3, %v1177_v26, %v1756_v55  ;;  %v511_v24 = vunpack.c.h.bf16 %v3108_v47  ;;  %v527_v56 = vunpack.c.h.bf16 %v3111_v48 }
 0x104   : > { %v543_v35 = vunpack.c.h.bf16 %v3116_v13  ;;  %v1758_v53 = vsel %vm1678_vm4, %v1289_v27, %v1757_v32  ;;  %v559_v31 = vunpack.c.h.bf16 %v3119_v23  ;;  %v575_v45 = vunpack.c.h.bf16 %v3122_v2  ;;  %v3204_v32 = vld [vmem:[%s2626_s6 + $0x38] sm:$0xff] }
 0x105   : > { %v591_v63 = vunpack.c.h.bf16 %v3472_v11  ;;  %v1759_v30 = vsel %vm1680_vm5, %v1401_v22, %v1758_v53  ;;  %v607_v1 = vunpack.c.h.bf16 %v3473_v61  ;;  %v623_v42 = vunpack.c.h.bf16 %v3474_v4  ;;  %v3213_v11 = vld [vmem:[%s2626_s6 + $0xf8] sm:$0xff] }
 0x106   : > { %v639_v47 = vunpack.c.h.bf16 %v3475_v38  ;;  %v1760_v48 = vsel %vm1682_vm6, %v1513_v33, %v1759_v30  ;;  %v709_v19 = vadd.f32 %v415_v29, %v399_v28  ;;  %v821_v13 = vadd.f32 %v447_v40, %v431_v36  ;;  %v3222_v38 = vld [vmem:[%s2626_s6 + $0x1b8] sm:$0xff] }
 0x107   : > { %v933_v25 = vadd.f32 %v479_v46, %v463_v41  ;;  %2141 = vmatmul.f32.vlgmr.msra.gmra.mxu3 %v1760_v48  ;;  %v1045_v44 = vadd.f32 %v511_v24, %v495_v10  ;;  %v1157_v23 = vadd.f32 %v543_v35, %v527_v56  ;;  %v1269_v5 = vadd.f32 %v575_v45, %v559_v31  ;;  %v3207_v24 = vld [vmem:[%s2626_s6 + $0x78] sm:$0xff] }
 0x108   : > { %v1381_v2 = vadd.f32 %v607_v1, %v591_v63  ;;  %v710_v8 = vrot.slane %v709_v19, 4  ;;  %v822_v37 = vrot.slane %v821_v13, 4  ;;  %v1493_v57 = vadd.f32 %v639_v47, %v623_v42  ;;  %v3210_v45 = vld [vmem:[%s2626_s6 + $0xb8] sm:$0xff] }
 0x109   : > { %v934_v51 = vrot.slane %v933_v25, 4  ;;  %v1046_v12 = vrot.slane %v1045_v44, 4  ;;  %v1158_v17 = vrot.slane %v1157_v23, 4  ;;  %v1270_v18 = vrot.slane %v1269_v5, 4  ;;  %v3216_v63 = vld [vmem:[%s2626_s6 + $0x138] sm:$0xff] }
 0x10a   : > { %v1382_v16 = vrot.slane %v1381_v2, 4  ;;  %v711_v43 = vadd.f32 %v710_v8, %v709_v19  ;;  %v823_v34 = vadd.f32 %v822_v37, %v821_v13  ;;  %v1494_v60 = vrot.slane %v1493_v57, 4  ;;  %v3219_v42 = vld [vmem:[%s2626_s6 + $0x178] sm:$0xff] }
 0x10b   : > { %v935_v52 = vadd.f32 %v934_v51, %v933_v25  ;;  %v1047_v50 = vadd.f32 %v1046_v12, %v1045_v44  ;;  %v1159_v58 = vadd.f32 %v1158_v17, %v1157_v23  ;;  %v1271_v6 = vadd.f32 %v1270_v18, %v1269_v5  ;;  %v3225_v47 = vld [vmem:[%s2626_s6 + $0x1f8] sm:$0xff] }
 0x10c   : > { %v1383_v54 = vadd.f32 %v1382_v16, %v1381_v2  ;;  %v712_v49 = vrot.slane %v711_v43, 2  ;;  %v824_v7 = vrot.slane %v823_v34, 2  ;;  %v1495_v15 = vadd.f32 %v1494_v60, %v1493_v57  ;;  %v3229_v13 = vld [vmem:[%s2626_s6 + $0x238] sm:$0xff] }
 0x10d   : > { %v936_v0 = vrot.slane %v935_v52, 2  ;;  %v1048_v9 = vrot.slane %v1047_v50, 2  ;;  %v1160_v59 = vrot.slane %v1159_v58, 2  ;;  %v1272_v20 = vrot.slane %v1271_v6, 2  ;;  %v3232_v25 = vld [vmem:[%s2626_s6 + $0x278] sm:$0xff] }
 0x10e   : > { %v1384_v39 = vrot.slane %v1383_v54, 2  ;;  %v713_v3 = vadd.f32 %v712_v49, %v711_v43  ;;  %v825_v62 = vadd.f32 %v824_v7, %v823_v34  ;;  %v1496_v27 = vrot.slane %v1495_v15, 2  ;;  %v3235_v44 = vld [vmem:[%s2626_s6 + $0x2b8] sm:$0xff] }
 0x10f   : > { %v937_v26 = vadd.f32 %v936_v0, %v935_v52  ;;  %v1049_v22 = vadd.f32 %v1048_v9, %v1047_v50  ;;  %v1161_v33 = vadd.f32 %v1160_v59, %v1159_v58  ;;  %v1273_v21 = vadd.f32 %v1272_v20, %v1271_v6  ;;  %v3241_v8 = vld [vmem:[%s2626_s6 + $0x2f8] sm:$0xff] }
 0x110   : > { %v1385_v28 = vadd.f32 %v1384_v39, %v1383_v54  ;;  %v714_v14 = vrot.slane %v713_v3, 1  ;;  %v826_v29 = vrot.slane %v825_v62, 1  ;;  %v1497_v40 = vadd.f32 %v1496_v27, %v1495_v15  ;;  %v3244_v37 = vld [vmem:[%s2626_s6 + $0x338] sm:$0xff] }
 0x111   : > { %v938_v36 = vrot.slane %v937_v26, 1  ;;  %v1050_v55 = vrot.slane %v1049_v22, 1  ;;  %v1162_v41 = vrot.slane %v1161_v33, 1  ;;  %v1274_v46 = vrot.slane %v1273_v21, 1  ;;  %v3247_v51 = vld [vmem:[%s2626_s6 + $0x378] sm:$0xff] }
 0x112   : > { %v1386_v10 = vrot.slane %v1385_v28, 1  ;;  %v715_v56 = vadd.f32 %v714_v14, %v713_v3  ;;  %v827_v35 = vadd.f32 %v826_v29, %v825_v62  ;;  %v1498_v31 = vrot.slane %v1497_v40, 1  ;;  %v3254_v16 = vld [vmem:[%s2626_s6 + $0x3b8] sm:$0xff] }
 0x113   : > { %v939_v53 = vadd.f32 %v938_v36, %v937_v26  ;;  %v1051_v30 = vadd.f32 %v1050_v55, %v1049_v22  ;;  %v1163_v61 = vadd.f32 %v1162_v41, %v1161_v33  ;;  %v1275_v1 = vadd.f32 %v1274_v46, %v1273_v21  ;;  %v3257_v43 = vld [vmem:[%s2626_s6 + $0x3f8] sm:$0xff] }
 0x114   : > { %v1387_v4 = vadd.f32 %v1386_v10, %v1385_v28  ;;  %v1499_v48 = vadd.f32 %v1498_v31, %v1497_v40  ;;  %v1740_v19 = vsel %vm1670_vm0, %v827_v35, %v715_v56  ;;  %v404_v23 = vunpack.c.l.bf16 %v3204_v32 }
 0x115   : > { %v420_v5 = vunpack.c.l.bf16 %v3207_v24  ;;  %v1741_v2 = vsel %vm1672_vm1, %v939_v53, %v1740_v19  ;;  %v436_v57 = vunpack.c.l.bf16 %v3210_v45  ;;  %v452_v12 = vunpack.c.l.bf16 %v3213_v11 }
 0x116   : > { %v468_v17 = vunpack.c.l.bf16 %v3216_v63  ;;  %v1742_v18 = vsel %vm1674_vm2, %v1051_v30, %v1741_v2  ;;  %v484_v34 = vunpack.c.l.bf16 %v3219_v42  ;;  %v500_v52 = vunpack.c.l.bf16 %v3222_v38 }
 0x117   : > { %v516_v60 = vunpack.c.l.bf16 %v3225_v47  ;;  %v1743_v50 = vsel %vm1676_vm3, %v1163_v61, %v1742_v18  ;;  %v532_v58 = vunpack.c.l.bf16 %v3229_v13  ;;  %v548_v6 = vunpack.c.l.bf16 %v3232_v25 }
 0x118   : > { %v564_v54 = vunpack.c.l.bf16 %v3235_v44  ;;  %v1744_v49 = vsel %vm1678_vm4, %v1275_v1, %v1743_v50  ;;  %v580_v7 = vunpack.c.l.bf16 %v3241_v8  ;;  %v596_v0 = vunpack.c.l.bf16 %v3244_v37 }
 0x119   : > { %v612_v15 = vunpack.c.l.bf16 %v3247_v51  ;;  %v1745_v9 = vsel %vm1680_vm5, %v1387_v4, %v1744_v49  ;;  %v628_v59 = vunpack.c.l.bf16 %v3254_v16  ;;  %v644_v20 = vunpack.c.l.bf16 %v3257_v43 }
 0x11a   : > { %v744_v39 = vadd.f32 %v420_v5, %v404_v23  ;;  %v1746_v3 = vsel %vm1682_vm6, %v1499_v48, %v1745_v9  ;;  %v856_v62 = vadd.f32 %v452_v12, %v436_v57  ;;  %v968_v26 = vadd.f32 %v484_v34, %v468_v17  ;;  %v3275_v9 = vld [vmem:[%s2626_s6 + $0x30] sm:$0xff] }
 0x11b   : > { %v1080_v27 = vadd.f32 %v516_v60, %v500_v52  ;;  %2101 = vmatmul.f32.vlgmr.msra.gmra.mxu1 %v1746_v3  ;;  %v1192_v33 = vadd.f32 %v548_v6, %v532_v58  ;;  %v1304_v21 = vadd.f32 %v580_v7, %v564_v54  ;;  %v1416_v28 = vadd.f32 %v612_v15, %v596_v0 }
 0x11c   : > { %v745_v22 = vrot.slane %v744_v39, 4  ;;  %v857_v14 = vrot.slane %v856_v62, 4  ;;  %v969_v29 = vrot.slane %v968_v26, 4  ;;  %v1528_v40 = vadd.f32 %v644_v20, %v628_v59 }
 0x11d   : > { %v1081_v36 = vrot.slane %v1080_v27, 4  ;;  %v1193_v41 = vrot.slane %v1192_v33, 4  ;;  %v1305_v46 = vrot.slane %v1304_v21, 4  ;;  %v1417_v10 = vrot.slane %v1416_v28, 4 }
 0x11e   : > { %v746_v55 = vadd.f32 %v745_v22, %v744_v39  ;;  %v858_v56 = vadd.f32 %v857_v14, %v856_v62  ;;  %v970_v35 = vadd.f32 %v969_v29, %v968_v26  ;;  %v1529_v31 = vrot.slane %v1528_v40, 4  ;;  %v3278_v62 = vld [vmem:[%s2626_s6 + $0x70] sm:$0xff] }
 0x11f   : > { %v1082_v53 = vadd.f32 %v1081_v36, %v1080_v27  ;;  %v1194_v61 = vadd.f32 %v1193_v41, %v1192_v33  ;;  %v1306_v1 = vadd.f32 %v1305_v46, %v1304_v21  ;;  %v1418_v4 = vadd.f32 %v1417_v10, %v1416_v28  ;;  %v3281_v26 = vld [vmem:[%s2626_s6 + $0xb0] sm:$0xff] }
 0x120   : > { %v747_v30 = vrot.slane %v746_v55, 2  ;;  %v859_v48 = vrot.slane %v858_v56, 2  ;;  %v971_v19 = vrot.slane %v970_v35, 2  ;;  %v1530_v5 = vadd.f32 %v1529_v31, %v1528_v40  ;;  %v3284_v28 = vld [vmem:[%s2626_s6 + $0xf0] sm:$0xff] }
 0x121   : > { %v1083_v23 = vrot.slane %v1082_v53, 2  ;;  %v1195_v57 = vrot.slane %v1194_v61, 2  ;;  %v1307_v12 = vrot.slane %v1306_v1, 2  ;;  %v1419_v17 = vrot.slane %v1418_v4, 2  ;;  %v3287_v14 = vld [vmem:[%s2626_s6 + $0x130] sm:$0xff] }
 0x122   : > { %v748_v2 = vadd.f32 %v747_v30, %v746_v55  ;;  %v860_v18 = vadd.f32 %v859_v48, %v858_v56  ;;  %v972_v34 = vadd.f32 %v971_v19, %v970_v35  ;;  %v1531_v60 = vrot.slane %v1530_v5, 2  ;;  %v3290_v29 = vld [vmem:[%s2626_s6 + $0x170] sm:$0xff] }
 0x123   : > { %v1084_v52 = vadd.f32 %v1083_v23, %v1082_v53  ;;  %v1196_v58 = vadd.f32 %v1195_v57, %v1194_v61  ;;  %v1308_v6 = vadd.f32 %v1307_v12, %v1306_v1  ;;  %v1420_v54 = vadd.f32 %v1419_v17, %v1418_v4  ;;  %v3293_v41 = vld [vmem:[%s2626_s6 + $0x1b0] sm:$0xff] }
 0x124   : > { %v749_v50 = vrot.slane %v748_v2, 1  ;;  %v861_v49 = vrot.slane %v860_v18, 1  ;;  %v973_v7 = vrot.slane %v972_v34, 1  ;;  %v1532_v15 = vadd.f32 %v1531_v60, %v1530_v5  ;;  %v3296_v46 = vld [vmem:[%s2626_s6 + $0x1f0] sm:$0xff] }
 0x125   : > { %v1085_v0 = vrot.slane %v1084_v52, 1  ;;  %v1197_v20 = vrot.slane %v1196_v58, 1  ;;  %v1309_v39 = vrot.slane %v1308_v6, 1  ;;  %v1421_v3 = vrot.slane %v1420_v54, 1  ;;  %v3299_v10 = vld [vmem:[%s2626_s6 + $0x230] sm:$0xff] }
 0x126   : > { %v750_v59 = vadd.f32 %v749_v50, %v748_v2  ;;  %v862_v27 = vadd.f32 %v861_v49, %v860_v18  ;;  %v974_v22 = vadd.f32 %v973_v7, %v972_v34  ;;  %v1533_v21 = vrot.slane %v1532_v15, 1  ;;  %v3304_v31 = vld [vmem:[%s2626_s6 + $0x270] sm:$0xff] }
 0x127   : > { %v1086_v33 = vadd.f32 %v1085_v0, %v1084_v52  ;;  %v1198_v36 = vadd.f32 %v1197_v20, %v1196_v58  ;;  %v1310_v40 = vadd.f32 %v1309_v39, %v1308_v6  ;;  %v1422_v55 = vadd.f32 %v1421_v3, %v1420_v54  ;;  %v3307_v30 = vld [vmem:[%s2626_s6 + $0x2b0] sm:$0xff] }
 0x128   : > { %v402_v56 = vunpack.c.l.bf16 %v3275_v9  ;;  %v1534_v35 = vadd.f32 %v1533_v21, %v1532_v15  ;;  %v1775_v53 = vsel %vm1670_vm0, %v862_v27, %v750_v59  ;;  %v3310_v61 = vld [vmem:[%s2626_s6 + $0x2f0] sm:$0xff]  ;;  %v418_v1 = vunpack.c.l.bf16 %v3278_v62 }
 0x129   : > { %v434_v4 = vunpack.c.l.bf16 %v3281_v26  ;;  %v1776_v48 = vsel %vm1672_vm1, %v974_v22, %v1775_v53  ;;  %v3316_v19 = vld [vmem:[%s2626_s6 + $0x330] sm:$0xff]  ;;  %v450_v2 = vunpack.c.l.bf16 %v3284_v28  ;;  %v466_v57 = vunpack.c.l.bf16 %v3287_v14 }
 0x12a   : > { %3476 = vst [vmem:[#allocation9_spill] sm:$0xff] %v3316_v19  ;;  %v3319_v23 = vld [vmem:[%s2626_s6 + $0x370] sm:$0xff]  ;;  %v482_v12 = vunpack.c.l.bf16 %v3290_v29  ;;  %v1777_v17 = vsel %vm1674_vm2, %v1086_v33, %v1776_v48  ;;  %v498_v34 = vunpack.c.l.bf16 %v3293_v41  ;;  %v514_v52 = vunpack.c.l.bf16 %v3296_v46 }
 0x12b   : > { %3477 = vst [vmem:[#allocation10_spill] sm:$0xff] %v3319_v23  ;;  %v3322_v5 = vld [vmem:[%s2626_s6 + $0x3b0] sm:$0xff]  ;;  %v530_v60 = vunpack.c.l.bf16 %v3299_v10  ;;  %v1778_v50 = vsel %vm1676_vm3, %v1198_v36, %v1777_v17  ;;  %v546_v58 = vunpack.c.l.bf16 %v3304_v31  ;;  %v562_v6 = vunpack.c.l.bf16 %v3307_v30 }
 0x12c   : > { %3478 = vst [vmem:[#allocation11_spill] sm:$0xff] %v3322_v5  ;;  %v3329_v18 = vld [vmem:[%s2626_s6 + $0x3f0] sm:$0xff]  ;;  %v578_v54 = vunpack.c.l.bf16 %v3310_v61  ;;  %v1779_v49 = vsel %vm1678_vm4, %v1310_v40, %v1778_v50  ;;  %v594_v7 = vunpack.c.l.bf16 %v3316_v19  ;;  %v610_v0 = vunpack.c.l.bf16 %v3319_v23 }
 0x12d   : > { %3479 = vst [vmem:[#allocation12_spill] sm:$0xff] %v3329_v18  ;;  %v626_v15 = vunpack.c.l.bf16 %v3322_v5  ;;  %v1780_v59 = vsel %vm1680_vm5, %v1422_v55, %v1779_v49  ;;  %v642_v20 = vunpack.c.l.bf16 %v3329_v18  ;;  %v730_v39 = vadd.f32 %v418_v1, %v402_v56 }
 0x12e   : > { %v842_v3 = vadd.f32 %v450_v2, %v434_v4  ;;  %v1781_v27 = vsel %vm1682_vm6, %v1534_v35, %v1780_v59  ;;  %v954_v22 = vadd.f32 %v482_v12, %v466_v57  ;;  %v1066_v33 = vadd.f32 %v514_v52, %v498_v34 }
 0x12f   : > { %v1178_v21 = vadd.f32 %v546_v58, %v530_v60  ;;  %2201 = vmatmul.f32.vlgmr.msrb.gmra.mxu2 %v1781_v27  ;;  %v731_v36 = vrot.slane %v730_v39, 4  ;;  %v1290_v53 = vadd.f32 %v578_v54, %v562_v6  ;;  %v1402_v48 = vadd.f32 %v610_v0, %v594_v7 }
 0x130   : > { %v843_v40 = vrot.slane %v842_v3, 4  ;;  %v955_v17 = vrot.slane %v954_v22, 4  ;;  %v1067_v50 = vrot.slane %v1066_v33, 4  ;;  %v1514_v5 = vadd.f32 %v642_v20, %v626_v15 }
 0x131   : > { %v1179_v23 = vrot.slane %v1178_v21, 4  ;;  %v732_v19 = vadd.f32 %v731_v36, %v730_v39  ;;  %v1291_v49 = vrot.slane %v1290_v53, 4  ;;  %v1403_v18 = vrot.slane %v1402_v48, 4 }
 0x132   : > { %v844_v55 = vadd.f32 %v843_v40, %v842_v3  ;;  %v956_v56 = vadd.f32 %v955_v17, %v954_v22  ;;  %v1068_v1 = vadd.f32 %v1067_v50, %v1066_v33  ;;  %v1515_v35 = vrot.slane %v1514_v5, 4 }
 0x133   : > { %v1180_v4 = vadd.f32 %v1179_v23, %v1178_v21  ;;  %v733_v2 = vrot.slane %v732_v19, 2  ;;  %v1292_v12 = vadd.f32 %v1291_v49, %v1290_v53  ;;  %v1404_v34 = vadd.f32 %v1403_v18, %v1402_v48 }
 0x134   : > { %v845_v57 = vrot.slane %v844_v55, 2  ;;  %v957_v52 = vrot.slane %v956_v56, 2  ;;  %v1069_v60 = vrot.slane %v1068_v1, 2  ;;  %v1516_v6 = vadd.f32 %v1515_v35, %v1514_v5 }
 0x135   : > { %v1181_v58 = vrot.slane %v1180_v4, 2  ;;  %v734_v54 = vadd.f32 %v733_v2, %v732_v19  ;;  %v1293_v0 = vrot.slane %v1292_v12, 2  ;;  %v1405_v15 = vrot.slane %v1404_v34, 2 }
 0x136   : > { %v846_v7 = vadd.f32 %v845_v57, %v844_v55  ;;  %v958_v59 = vadd.f32 %v957_v52, %v956_v56  ;;  %v1070_v20 = vadd.f32 %v1069_v60, %v1068_v1  ;;  %v1517_v3 = vrot.slane %v1516_v6, 2 }
 0x137   : > { %v1182_v39 = vadd.f32 %v1181_v58, %v1180_v4  ;;  %v735_v27 = vrot.slane %v734_v54, 1  ;;  %v1294_v23 = vadd.f32 %v1293_v0, %v1292_v12  ;;  %v1406_v33 = vadd.f32 %v1405_v15, %v1404_v34 }
 0x138   : > { %v847_v22 = vrot.slane %v846_v7, 1  ;;  %v959_v21 = vrot.slane %v958_v59, 1  ;;  %v1071_v36 = vrot.slane %v1070_v20, 1  ;;  %v1518_v18 = vadd.f32 %v1517_v3, %v1516_v6 }
 0x139   : > { %v1183_v40 = vrot.slane %v1182_v39, 1  ;;  %v736_v53 = vadd.f32 %v735_v27, %v734_v54  ;;  %v1295_v17 = vrot.slane %v1294_v23, 1  ;;  %v1407_v5 = vrot.slane %v1406_v33, 1 }
 0x13a   : > { %v848_v48 = vadd.f32 %v847_v22, %v846_v7  ;;  %v960_v19 = vadd.f32 %v959_v21, %v958_v59  ;;  %v1072_v50 = vadd.f32 %v1071_v36, %v1070_v20  ;;  %v1519_v49 = vrot.slane %v1518_v18, 1 }
 0x13b   : > { %v1184_v55 = vadd.f32 %v1183_v40, %v1182_v39  ;;  %v1296_v56 = vadd.f32 %v1295_v17, %v1294_v23  ;;  %v1408_v1 = vadd.f32 %v1407_v5, %v1406_v33  ;;  %v405_v35 = vunpack.c.h.bf16 %v3204_v32 }
 0x13c   : > { %v1761_v4 = vsel %vm1670_vm0, %v848_v48, %v736_v53  ;;  %v1520_v2 = vadd.f32 %v1519_v49, %v1518_v18  ;;  %v421_v12 = vunpack.c.h.bf16 %v3207_v24  ;;  %v437_v34 = vunpack.c.h.bf16 %v3210_v45 }
 0x13d   : > { %v1762_v57 = vsel %vm1672_vm1, %v960_v19, %v1761_v4  ;;  %v453_v60 = vunpack.c.h.bf16 %v3213_v11  ;;  %v469_v58 = vunpack.c.h.bf16 %v3216_v63  ;;  %v485_v6 = vunpack.c.h.bf16 %v3219_v42 }
 0x13e   : > { %v1763_v52 = vsel %vm1674_vm2, %v1072_v50, %v1762_v57  ;;  %v501_v7 = vunpack.c.h.bf16 %v3222_v38  ;;  %v517_v32 = vunpack.c.h.bf16 %v3225_v47  ;;  %v533_v0 = vunpack.c.h.bf16 %v3229_v13 }
 0x13f   : > { %v1764_v54 = vsel %vm1676_vm3, %v1184_v55, %v1763_v52  ;;  %v549_v45 = vunpack.c.h.bf16 %v3232_v25  ;;  %v565_v15 = vunpack.c.h.bf16 %v3235_v44  ;;  %v581_v11 = vunpack.c.h.bf16 %v3241_v8 }
 0x140   : > { %v1765_v24 = vsel %vm1678_vm4, %v1296_v56, %v1764_v54  ;;  %v597_v42 = vunpack.c.h.bf16 %v3244_v37  ;;  %v613_v59 = vunpack.c.h.bf16 %v3247_v51  ;;  %v629_v38 = vunpack.c.h.bf16 %v3254_v16 }
 0x141   : > { %v1766_v63 = vsel %vm1680_vm5, %v1408_v1, %v1765_v24  ;;  %v645_v13 = vunpack.c.h.bf16 %v3257_v43  ;;  %v751_v20 = vadd.f32 %v421_v12, %v405_v35  ;;  %v863_v39 = vadd.f32 %v453_v60, %v437_v34 }
 0x142   : > { %v1767_v47 = vsel %vm1682_vm6, %v1520_v2, %v1766_v63  ;;  %v975_v25 = vadd.f32 %v485_v6, %v469_v58  ;;  %v1087_v3 = vadd.f32 %v517_v32, %v501_v7  ;;  %v1199_v44 = vadd.f32 %v549_v45, %v533_v0 }
 0x143   : > { %2161 = vmatmul.f32.vlgmr.msrb.gmra.mxu0 %v1767_v47  ;;  %v1311_v27 = vadd.f32 %v581_v11, %v565_v15  ;;  %v752_v8 = vrot.slane %v751_v20, 4  ;;  %v864_v22 = vrot.slane %v863_v39, 4  ;;  %v1423_v23 = vadd.f32 %v613_v59, %v597_v42 }
 0x144   : > { %v1535_v33 = vadd.f32 %v645_v13, %v629_v38  ;;  %v976_v37 = vrot.slane %v975_v25, 4  ;;  %v1088_v21 = vrot.slane %v1087_v3, 4  ;;  %v1200_v51 = vrot.slane %v1199_v44, 4 }
 0x145   : > { %v1312_v36 = vrot.slane %v1311_v27, 4  ;;  %v753_v16 = vadd.f32 %v752_v8, %v751_v20  ;;  %v865_v40 = vadd.f32 %v864_v22, %v863_v39  ;;  %v1424_v18 = vrot.slane %v1423_v23, 4 }
 0x146   : > { %v1536_v53 = vrot.slane %v1535_v33, 4  ;;  %v977_v43 = vadd.f32 %v976_v37, %v975_v25  ;;  %v1089_v48 = vadd.f32 %v1088_v21, %v1087_v3  ;;  %v1201_v17 = vadd.f32 %v1200_v51, %v1199_v44 }
 0x147   : > { %v1313_v5 = vadd.f32 %v1312_v36, %v1311_v27  ;;  %v754_v19 = vrot.slane %v753_v16, 2  ;;  %v866_v50 = vrot.slane %v865_v40, 2  ;;  %v1425_v55 = vadd.f32 %v1424_v18, %v1423_v23 }
 0x148   : > { %v1537_v49 = vadd.f32 %v1536_v53, %v1535_v33  ;;  %v978_v56 = vrot.slane %v977_v43, 2  ;;  %v1090_v1 = vrot.slane %v1089_v48, 2  ;;  %v1202_v4 = vrot.slane %v1201_v17, 2  ;;  %v3480_v53 = vld [vmem:[#allocation9_spill] sm:$0xff] }
 0x149   : > { %v1314_v35 = vrot.slane %v1313_v5, 2  ;;  %v755_v2 = vadd.f32 %v754_v19, %v753_v16  ;;  %v867_v57 = vadd.f32 %v866_v50, %v865_v40  ;;  %v1426_v12 = vrot.slane %v1425_v55, 2 }
 0x14a   : > { %v1538_v34 = vrot.slane %v1537_v49, 2  ;;  %v979_v52 = vadd.f32 %v978_v56, %v977_v43  ;;  %v1091_v60 = vadd.f32 %v1090_v1, %v1089_v48  ;;  %v1203_v58 = vadd.f32 %v1202_v4, %v1201_v17  ;;  %v3481_v43 = vld [vmem:[#allocation10_spill] sm:$0xff]  ;;  %v3482_v48 = vld [vmem:[#allocation11_spill] sm:$0xff] }
 0x14b   : > { %v1315_v6 = vadd.f32 %v1314_v35, %v1313_v5  ;;  %v756_v54 = vrot.slane %v755_v2, 1  ;;  %v868_v7 = vrot.slane %v867_v57, 1  ;;  %v1427_v32 = vadd.f32 %v1426_v12, %v1425_v55  ;;  %v3483_v5 = vld [vmem:[#allocation12_spill] sm:$0xff] }
 0x14c   : > { %v1539_v0 = vadd.f32 %v1538_v34, %v1537_v49  ;;  %v980_v24 = vrot.slane %v979_v52, 1  ;;  %v1092_v45 = vrot.slane %v1091_v60, 1  ;;  %v1204_v15 = vrot.slane %v1203_v58, 1 }
 0x14d   : > { %v1316_v11 = vrot.slane %v1315_v6, 1  ;;  %v757_v63 = vadd.f32 %v756_v54, %v755_v2  ;;  %v869_v42 = vadd.f32 %v868_v7, %v867_v57  ;;  %v1428_v59 = vrot.slane %v1427_v32, 1 }
 0x14e   : > { %v1540_v38 = vrot.slane %v1539_v0, 1  ;;  %v981_v47 = vadd.f32 %v980_v24, %v979_v52  ;;  %v1093_v13 = vadd.f32 %v1092_v45, %v1091_v60  ;;  %v1205_v20 = vadd.f32 %v1204_v15, %v1203_v58 }
 0x14f   : > { %v1317_v39 = vadd.f32 %v1316_v11, %v1315_v6  ;;  %v1429_v25 = vadd.f32 %v1428_v59, %v1427_v32  ;;  %v1782_v44 = vsel %vm1670_vm0, %v869_v42, %v757_v63  ;;  %v403_v27 = vunpack.c.h.bf16 %v3275_v9 }
 0x150   : > { %v1541_v3 = vadd.f32 %v1540_v38, %v1539_v0  ;;  %v1783_v8 = vsel %vm1672_vm1, %v981_v47, %v1782_v44  ;;  %v419_v22 = vunpack.c.h.bf16 %v3278_v62  ;;  %v435_v23 = vunpack.c.h.bf16 %v3281_v26 }
 0x151   : > { %v451_v33 = vunpack.c.h.bf16 %v3284_v28  ;;  %v1784_v37 = vsel %vm1674_vm2, %v1093_v13, %v1783_v8  ;;  %v467_v21 = vunpack.c.h.bf16 %v3287_v14  ;;  %v483_v51 = vunpack.c.h.bf16 %v3290_v29 }
 0x152   : > { %v499_v36 = vunpack.c.h.bf16 %v3293_v41  ;;  %v1785_v16 = vsel %vm1676_vm3, %v1205_v20, %v1784_v37  ;;  %v515_v9 = vunpack.c.h.bf16 %v3296_v46  ;;  %v531_v40 = vunpack.c.h.bf16 %v3299_v10 }
 0x153   : > { %v547_v62 = vunpack.c.h.bf16 %v3304_v31  ;;  %v1786_v26 = vsel %vm1678_vm4, %v1317_v39, %v1785_v16  ;;  %v563_v28 = vunpack.c.h.bf16 %v3307_v30  ;;  %v579_v18 = vunpack.c.h.bf16 %v3310_v61 }
 0x154   : > { %v595_v14 = vunpack.c.h.bf16 %v3480_v53  ;;  %v1787_v29 = vsel %vm1680_vm5, %v1429_v25, %v1786_v26  ;;  %v611_v41 = vunpack.c.h.bf16 %v3481_v43  ;;  %v627_v17 = vunpack.c.h.bf16 %v3482_v48 }
 0x155   : > { %v643_v46 = vunpack.c.h.bf16 %v3483_v5  ;;  %v1788_v10 = vsel %vm1682_vm6, %v1541_v3, %v1787_v29  ;;  %v737_v19 = vadd.f32 %v419_v22, %v403_v27  ;;  %v849_v31 = vadd.f32 %v451_v33, %v435_v23 }
 0x156   : > { %v961_v50 = vadd.f32 %v483_v51, %v467_v21  ;;  %2221 = vmatmul.f32.vlgmr.msrb.gmra.mxu3 %v1788_v10  ;;  %v1073_v55 = vadd.f32 %v515_v9, %v499_v36  ;;  %v1185_v30 = vadd.f32 %v547_v62, %v531_v40  ;;  %v1297_v49 = vadd.f32 %v579_v18, %v563_v28  ;;  %v2398_v10 = vld [vmem:[%s3426_s2] ss:$0 sm:$0xff] }
 0x157   : > { %v1409_v61 = vadd.f32 %v611_v41, %v595_v14  ;;  %v738_v56 = vrot.slane %v737_v19, 4  ;;  %v850_v1 = vrot.slane %v849_v31, 4  ;;  %v1521_v35 = vadd.f32 %v643_v46, %v627_v17 }
 0x158   : > { %v962_v4 = vrot.slane %v961_v50, 4  ;;  %v1074_v2 = vrot.slane %v1073_v55, 4  ;;  %v1186_v57 = vrot.slane %v1185_v30, 4  ;;  %v1298_v12 = vrot.slane %v1297_v49, 4 }
 0x159   : > { %v1410_v34 = vrot.slane %v1409_v61, 4  ;;  %v739_v52 = vadd.f32 %v738_v56, %v737_v19  ;;  %v851_v60 = vadd.f32 %v850_v1, %v849_v31  ;;  %v1522_v6 = vrot.slane %v1521_v35, 4  ;;  %v1922_v19 = vpop.f32.mrf.mxu0 }
 0x15a   : > { %v963_v58 = vadd.f32 %v962_v4, %v961_v50  ;;  %v1075_v54 = vadd.f32 %v1074_v2, %v1073_v55  ;;  %v1187_v7 = vadd.f32 %v1186_v57, %v1185_v30  ;;  %v1299_v32 = vadd.f32 %v1298_v12, %v1297_v49  ;;  %v1942_v50 = vpop.f32.mrf.mxu1  ;;  %v1962_v30 = vpop.f32.mrf.mxu2 }
 0x15b   : > { %v1411_v0 = vadd.f32 %v1410_v34, %v1409_v61  ;;  %v740_v24 = vrot.slane %v739_v52, 2  ;;  %v852_v45 = vrot.slane %v851_v60, 2  ;;  %v1523_v11 = vadd.f32 %v1522_v6, %v1521_v35  ;;  %v1982_v61 = vpop.f32.mrf.mxu3 }
 0x15c   : > { %v964_v15 = vrot.slane %v963_v58, 2  ;;  %v1076_v63 = vrot.slane %v1075_v54, 2  ;;  %v1188_v42 = vrot.slane %v1187_v7, 2  ;;  %v1300_v59 = vrot.slane %v1299_v32, 2 }
 0x15d   : > { %v1412_v38 = vrot.slane %v1411_v0, 2  ;;  %v741_v47 = vadd.f32 %v740_v24, %v739_v52  ;;  %v853_v13 = vadd.f32 %v852_v45, %v851_v60  ;;  %v1524_v39 = vrot.slane %v1523_v11, 2 }
 0x15e   : > { %v965_v20 = vadd.f32 %v964_v15, %v963_v58  ;;  %v1077_v25 = vadd.f32 %v1076_v63, %v1075_v54  ;;  %v1189_v3 = vadd.f32 %v1188_v42, %v1187_v7  ;;  %v1301_v44 = vadd.f32 %v1300_v59, %v1299_v32 }
 0x15f   : > { %v1413_v27 = vadd.f32 %v1412_v38, %v1411_v0  ;;  %v742_v8 = vrot.slane %v741_v47, 1  ;;  %v854_v22 = vrot.slane %v853_v13, 1  ;;  %v1525_v33 = vadd.f32 %v1524_v39, %v1523_v11 }
 0x160   : > { %v966_v23 = vrot.slane %v965_v20, 1  ;;  %v1078_v37 = vrot.slane %v1077_v25, 1  ;;  %v1190_v21 = vrot.slane %v1189_v3, 1  ;;  %v1302_v51 = vrot.slane %v1301_v44, 1 }
 0x161   : > { %v1414_v36 = vrot.slane %v1413_v27, 1  ;;  %v743_v16 = vadd.f32 %v742_v8, %v741_v47  ;;  %v855_v9 = vadd.f32 %v854_v22, %v853_v13  ;;  %v1526_v62 = vrot.slane %v1525_v33, 1  ;;  %v2002_v1 = vpop.f32.mrf.mxu0 }
 0x162   : > { %v967_v40 = vadd.f32 %v966_v23, %v965_v20  ;;  %v1079_v26 = vadd.f32 %v1078_v37, %v1077_v25  ;;  %v1191_v28 = vadd.f32 %v1190_v21, %v1189_v3  ;;  %v1303_v18 = vadd.f32 %v1302_v51, %v1301_v44  ;;  %v2022_v35 = vpop.f32.mrf.mxu1  ;;  %v2042_v57 = vpop.f32.mrf.mxu2 }
 0x163   : > { %v1768_v53 = vsel %vm1670_vm0, %v855_v9, %v743_v16  ;;  %v1415_v14 = vadd.f32 %v1414_v36, %v1413_v27  ;;  %v1527_v43 = vadd.f32 %v1526_v62, %v1525_v33  ;;  %v1923_v31 = vadd.f32 %v2398_v10, %v1922_v19  ;;  %v2062_v34 = vpop.f32.mrf.mxu3 }
 0x164   : > { %v1769_v29 = vsel %vm1672_vm1, %v967_v40, %v1768_v53 }
 0x165   : > { %v1770_v41 = vsel %vm1674_vm2, %v1079_v26, %v1769_v29  ;;  %v1943_v55 = vadd.f32 %v1942_v50, %v1923_v31 }
 0x166   : > { %v1771_v48 = vsel %vm1676_vm3, %v1191_v28, %v1770_v41 }
 0x167   : > { %v1772_v17 = vsel %vm1678_vm4, %v1303_v18, %v1771_v48  ;;  %v1963_v49 = vadd.f32 %v1962_v30, %v1943_v55 }
 0x168   : > { %v1773_v5 = vsel %vm1680_vm5, %v1415_v14, %v1772_v17 }
 0x169   : > { %v1774_v46 = vsel %vm1682_vm6, %v1527_v43, %v1773_v5  ;;  %v1983_v56 = vadd.f32 %v1982_v61, %v1963_v49 }
 0x16a   : > { %2181 = vmatmul.f32.vlgmr.msrb.gmra.mxu1 %v1774_v46  ;;  %v2122_v7 = vpop.f32.mrf.mxu2 }
 0x16b   : > { %v2003_v4 = vadd.f32 %v2002_v1, %v1983_v56 }
 0x16d   : > { %v2023_v2 = vadd.f32 %v2022_v35, %v2003_v4 }
 0x16f   : > { %v2043_v12 = vadd.f32 %v2042_v57, %v2023_v2 }
 0x171   : > { %v2063_v52 = vadd.f32 %v2062_v34, %v2043_v12  ;;  %v2082_v60 = vpop.f32.mrf.mxu0 }
 0x173   : > { %v2083_v58 = vadd.f32 %v2082_v60, %v2063_v52 }
 0x18a   : > { %v2142_v0 = vpop.f32.mrf.mxu3 }
 0x198   : > { %v2102_v6 = vpop.f32.mrf.mxu1 }
 0x199   : > { %v2103_v54 = vadd.f32 %v2102_v6, %v2083_v58 }
 0x19b   : > { %v2123_v32 = vadd.f32 %v2122_v7, %v2103_v54 }
 0x19d   : > { %v2143_v24 = vadd.f32 %v2142_v0, %v2123_v32 }
 0x1b2   : > { %v2202_v63 = vpop.f32.mrf.mxu2 }
 0x1c0   : > { %v2162_v45 = vpop.f32.mrf.mxu0 }
 0x1c1   : > { %v2163_v15 = vadd.f32 %v2162_v45, %v2143_v24 }
 0x1d9   : > { %v2222_v59 = vpop.f32.mrf.mxu3 }
 0x1e7   : > { %v2182_v11 = vpop.f32.mrf.mxu1 }
 0x1e8   : > { %v2183_v42 = vadd.f32 %v2182_v11, %v2163_v15 }
 0x1ea   : > { %v2203_v38 = vadd.f32 %v2202_v63, %v2183_v42 }
 0x1ec   : > { %v2223_v47 = vadd.f32 %v2222_v59, %v2203_v38 }
 0x1ee   : > { %2226 = vst.msk [vmem:[%s225_s4] sm:$0xff] %vm2225_vm7, %v2223_v47 }
 0x1ef PF: > { %s17_s17 = sadd.s32 1, %s2513_s17   ;;  %s3484_s12 = smov %s2497_s13 }
 0x1f0   : > { %p14_p2 = scmp.ge.s32.totalorder %s17_s17, 4   ;;  %s3485_s13 = smov %s2501_s14 }
 0x1f1   : > { %s3486_s14 = smov %s2619_s21  ;;  %s3487_s15 = smov %s2509_s16 }
 0x1f2   : > { %s3488_s16 = smov %s3490_s30  ;;  %16 = sbr.rel (!%p14_p2) target bundleno = 5 (0x5), region = 85 }
 0x1f7   :  { %2246 = vsyncpa [#allocation4], 1 }
 0x1f8   :  { %2248 = vsyncpa [#allocation4 + $0x1], 1 }
 0x1f9   :  { %2249 = vsyncpa [#allocation6], 1 }

</bundles_post_ra>
